<compile_context>
chip_gen: v6e
topology: v6e:2x2x1
jax: 0.10.0
libtpu: 0.0.40
codegen_flags: <defaults>
</compile_context>

<pallas_src>
import functools

import jax
import jax.numpy as jnp
from jax.experimental import pallas as pl
from jax.experimental.pallas import tpu as pltpu

LN_EPS = 1e-5  # torch.nn.LayerNorm default

# tile caps (conservative across v5e / v6e / v7x VMEM budgets)
_TM = 256          # row tile (generic matmul / fused row kernels)
_TN = 512          # output-feature tile (generic matmul)
_TK = 512          # reduction tile (generic matmul)
_BQ = 256          # attention query tile (fills 256-wide MXU on v6e/v7x)
_BK = 128          # attention key/value tile (flash inner axis)
_NEG_INF = -1e30
_VMEM_LIMIT = 48 * 1024 * 1024   # explicit scoped-VMEM budget (fits v7x 64MiB)


# ------------------------------ small helpers ------------------------------ #

def _round_up(n, m):
    return ((n + m - 1) // m) * m


def _pad_axis(a, axis, target):
    pad = target - a.shape[axis]
    if pad == 0:
        return a
    widths = [(0, 0)] * a.ndim
    widths[axis] = (0, pad)
    return jnp.pad(a, widths)


def _row_tiling(T):
    """Pad row count / pick a row tile satisfying the (8,128) rule.

    When there are >= 256 rows the tile is split so the grid has at least two
    parallel blocks (keeps both v7x TensorCores busy)."""
    if T > _TM:
        Tp = _round_up(T, _TM)
        return Tp, _TM
    Tp = _round_up(T, 8)
    if Tp >= 256 and Tp % 16 == 0:
        return Tp, Tp // 2
    return Tp, Tp


# nn.GELU() default is the exact erf form.  erf lowering inside Mosaic is not
# guaranteed, so erf is evaluated with the Abramowitz&Stegun 7.1.26 polynomial
# (|err| <= 1.5e-7, i.e. f32-level accuracy) using only exp/mul/add/select.
_ERF_A1 = 0.254829592
_ERF_A2 = -0.284496736
_ERF_A3 = 1.421413741
_ERF_A4 = -1.453152027
_ERF_A5 = 1.061405429
_ERF_P = 0.3275911
_INV_SQRT2 = 0.7071067811865476


def _erf_approx(x):
    ax = jnp.where(x >= 0, x, -x)
    t = 1.0 / (1.0 + _ERF_P * ax)
    poly = t * (_ERF_A1 + t * (_ERF_A2 + t * (_ERF_A3 + t * (_ERF_A4 + t * _ERF_A5))))
    y = 1.0 - poly * jnp.exp(-ax * ax)
    return jnp.where(x >= 0, y, -y)


def _gelu(x):
    return 0.5 * x * (1.0 + _erf_approx(x * _INV_SQRT2))


# ----------------------------- Pallas kernels ------------------------------ #

def _matmul_kernel(x_ref, w_ref, b_ref, o_ref, acc_ref):
    """Tiled (M,N,K) matmul + bias; bf16 MXU inputs, f32 accumulation."""
    k = pl.program_id(2)

    @pl.when(k == 0)
    def _():
        acc_ref[...] = jnp.zeros_like(acc_ref)

    acc_ref[...] += jnp.dot(
        x_ref[...].astype(jnp.bfloat16),     # no-op when input is already bf16
        w_ref[...].astype(jnp.bfloat16),     # weights are pre-cast -> no-op
        preferred_element_type=jnp.float32,
    )

    @pl.when(k == pl.num_programs(2) - 1)
    def _():
        o_ref[...] = (acc_ref[...] + b_ref[...]).astype(o_ref.dtype)


def pallas_linear(x, w, b, out_dtype=jnp.float32):
    """y = x @ w + b, tiled over (rows, out-features, reduction)."""
    T, Din = x.shape
    Dout = w.shape[1]

    Tp, tm = _row_tiling(T)
    if Dout > _TN:
        Np, tn = _round_up(Dout, _TN), _TN
    else:
        Np = _round_up(Dout, 128)      # lane-dense output store
        tn = Np
    if Din > _TK:
        Kp, tk = _round_up(Din, _TK), _TK
    else:
        Kp, tk = Din, Din

    xp = _pad_axis(_pad_axis(x, 0, Tp), 1, Kp)
    wp = _pad_axis(_pad_axis(w, 0, Kp), 1, Np)
    bp = _pad_axis(b.reshape(1, Dout).astype(jnp.float32), 1, Np)

    out = pl.pallas_call(
        _matmul_kernel,
        out_shape=jax.ShapeDtypeStruct((Tp, Np), out_dtype),
        grid=(Tp // tm, Np // tn, Kp // tk),
        in_specs=[
            pl.BlockSpec((tm, tk), lambda i, j, k: (i, k)),
            pl.BlockSpec((tk, tn), lambda i, j, k: (k, j)),
            pl.BlockSpec((1, tn), lambda i, j, k: (0, j)),
        ],
        out_specs=pl.BlockSpec((tm, tn), lambda i, j, k: (i, j)),
        scratch_shapes=[pltpu.VMEM((tm, tn), jnp.float32)],
        compiler_params=pltpu.CompilerParams(
            dimension_semantics=("parallel", "parallel", "arbitrary"),
            vmem_limit_bytes=_VMEM_LIMIT),
    )(xp, wp, bp)
    if Tp == T and Np == Dout:
        return out
    return out[:T, :Dout]


def _flash_attn_kernel(q_ref, k_ref, v_ref, o_ref, m_ref, l_ref, acc_ref,
                       *, scale, sep, nheads):
    """One (batch, q-tile, kv-tile) flash step; all heads of the block.

    q/k/v blocks are read straight out of the (S, B, 3, H, dh) qkv projection
    (no XLA head transpose); the output is written in (S, B, H, dh)."""
    kv = pl.program_id(2)
    bq = q_ref.shape[0]
    bk = k_ref.shape[0]
    dh = q_ref.shape[-1]
    H = nheads

    @pl.when(kv == 0)
    def _():
        m_ref[...] = jnp.full((H, bq, 1), _NEG_INF, jnp.float32)
        l_ref[...] = jnp.zeros((H, bq, 1), jnp.float32)
        acc_ref[...] = jnp.zeros((H, bq, dh), jnp.float32)

    q = q_ref[...].reshape(bq, H, dh)
    k = k_ref[...].reshape(bk, H, dh)
    v = v_ref[...].reshape(bk, H, dh)

    # efficient_eval_masking: only keys with index < single_eval_pos are valid
    key_valid = (kv * bk + jax.lax.broadcasted_iota(jnp.int32, (1, bk), 1)) < sep

    for h in range(H):                                   # static unroll, 2D MXU matmuls
        q_h = (q[:, h, :] * scale).astype(jnp.bfloat16)  # (bq, dh)
        k_h = k[:, h, :].astype(jnp.bfloat16)            # (bk, dh)
        v_h = v[:, h, :].astype(jnp.bfloat16)
        s = jax.lax.dot_general(q_h, k_h, (((1,), (1,)), ((), ())),
                                preferred_element_type=jnp.float32)   # (bq, bk)
        s = jnp.where(key_valid, s, _NEG_INF)
        m_prev = m_ref[h]                                 # (bq, 1)
        m_new = jnp.maximum(m_prev, jnp.max(s, axis=-1, keepdims=True))
        alpha = jnp.exp(m_prev - m_new)
        p = jnp.exp(s - m_new)
        l_ref[h] = alpha * l_ref[h] + jnp.sum(p, axis=-1, keepdims=True)
        acc_ref[h] = alpha * acc_ref[h] + jnp.dot(
            p.astype(jnp.bfloat16), v_h, preferred_element_type=jnp.float32)
        m_ref[h] = m_new

    @pl.when(kv == pl.num_programs(2) - 1)
    def _():
        for h in range(H):
            inv_l = pl.reciprocal(l_ref[h], approx=True)   # EUP, off the VALU slot
            o_ref[:, 0, h, :] = (acc_ref[h] * inv_l).astype(o_ref.dtype)


def pallas_attention(qkv, S, B, nhead, dh, sep):
    """Flash attention over the first `sep` (train) keys.

    qkv: (S*B, 3*nhead*dh) bf16 in torch in_proj layout [q | k | v], head-major.
    Returns (S, B, nhead, dh) bf16 (reshape to (S*B, E) is free / head-major)."""
    qkv5 = qkv.reshape(S, B, 3, nhead, dh)
    if S > _BQ:
        Sp, bq, bk = _round_up(S, _BQ), _BQ, _BK
    else:
        Sp = _round_up(S, 8)
        bq = bk = Sp
    qkv5 = _pad_axis(qkv5, 0, Sp)
    n_kv = -(-sep // bk)                 # only kv tiles containing valid keys
    scale = 1.0 / (dh ** 0.5)            # torch MHA head_dim**-0.5 (applied to q)

    out = pl.pallas_call(
        functools.partial(_flash_attn_kernel, scale=scale, sep=sep, nheads=nhead),
        out_shape=jax.ShapeDtypeStruct((Sp, B, nhead, dh), jnp.bfloat16),
        grid=(B, Sp // bq, n_kv),
        in_specs=[
            pl.BlockSpec((bq, 1, 1, nhead, dh), lambda b, qi, kv: (qi, b, 0, 0, 0)),
            pl.BlockSpec((bk, 1, 1, nhead, dh), lambda b, qi, kv: (kv, b, 1, 0, 0)),
            pl.BlockSpec((bk, 1, 1, nhead, dh), lambda b, qi, kv: (kv, b, 2, 0, 0)),
        ],
        out_specs=pl.BlockSpec((bq, 1, nhead, dh), lambda b, qi, kv: (qi, b, 0, 0)),
        scratch_shapes=[
            pltpu.VMEM((nhead, bq, 1), jnp.float32),    # running max m
            pltpu.VMEM((nhead, bq, 1), jnp.float32),    # running denom l
            pltpu.VMEM((nhead, bq, dh), jnp.float32),   # running context acc
        ],
        compiler_params=pltpu.CompilerParams(
            dimension_semantics=("parallel", "parallel", "arbitrary"),
            vmem_limit_bytes=_VMEM_LIMIT),
    )(qkv5, qkv5, qkv5)
    if Sp != S:
        out = out[:S]
    return out


def _linear_add_ln_kernel(x_ref, r_ref, w_ref, b_ref, g_ref, bb_ref, o_ref):
    """LayerNorm((x @ w + b) + residual) with torch semantics (f32 stats)."""
    h = jnp.dot(x_ref[...].astype(jnp.bfloat16),
                w_ref[...].astype(jnp.bfloat16),
                preferred_element_type=jnp.float32)
    h = h + b_ref[...] + r_ref[...]
    mu = jnp.mean(h, axis=-1, keepdims=True)
    var = jnp.mean((h - mu) ** 2, axis=-1, keepdims=True)
    o_ref[...] = (h - mu) * jax.lax.rsqrt(var + LN_EPS) * g_ref[...] + bb_ref[...]


def pallas_linear_add_ln(x, res, w, b, gamma, beta):
    T, Din = x.shape
    E = w.shape[1]
    Tp, tm = _row_tiling(T)
    xp = _pad_axis(x, 0, Tp)
    rp = _pad_axis(res, 0, Tp)
    out = pl.pallas_call(
        _linear_add_ln_kernel,
        out_shape=jax.ShapeDtypeStruct((Tp, E), jnp.float32),
        grid=(Tp // tm,),
        in_specs=[
            pl.BlockSpec((tm, Din), lambda i: (i, 0)),
            pl.BlockSpec((tm, E), lambda i: (i, 0)),
            pl.BlockSpec((Din, E), lambda i: (0, 0)),
            pl.BlockSpec((1, E), lambda i: (0, 0)),
            pl.BlockSpec((1, E), lambda i: (0, 0)),
            pl.BlockSpec((1, E), lambda i: (0, 0)),
        ],
        out_specs=pl.BlockSpec((tm, E), lambda i: (i, 0)),
        compiler_params=pltpu.CompilerParams(
            dimension_semantics=("parallel",),
            vmem_limit_bytes=_VMEM_LIMIT),
    )(xp, rp, w, b.reshape(1, E), gamma.reshape(1, E), beta.reshape(1, E))
    return out[:T]


def _ffn_ln_kernel(x_ref, w1_ref, b1_ref, w2_ref, b2_ref, g_ref, bb_ref, o_ref):
    """LayerNorm(x + Linear2(GELU(Linear1(x)))) fused per row tile."""
    x = x_ref[...]
    h = jnp.dot(x.astype(jnp.bfloat16), w1_ref[...].astype(jnp.bfloat16),
                preferred_element_type=jnp.float32) + b1_ref[...]
    h = _gelu(h)
    f = jnp.dot(h.astype(jnp.bfloat16), w2_ref[...].astype(jnp.bfloat16),
                preferred_element_type=jnp.float32) + b2_ref[...]
    y = x + f
    mu = jnp.mean(y, axis=-1, keepdims=True)
    var = jnp.mean((y - mu) ** 2, axis=-1, keepdims=True)
    o_ref[...] = (y - mu) * jax.lax.rsqrt(var + LN_EPS) * g_ref[...] + bb_ref[...]


def pallas_ffn_ln(x, w1, b1, w2, b2, gamma, beta):
    T, E = x.shape
    nhid = w1.shape[1]
    Tp, tm = _row_tiling(T)
    xp = _pad_axis(x, 0, Tp)
    out = pl.pallas_call(
        _ffn_ln_kernel,
        out_shape=jax.ShapeDtypeStruct((Tp, E), jnp.float32),
        grid=(Tp // tm,),
        in_specs=[
            pl.BlockSpec((tm, E), lambda i: (i, 0)),
            pl.BlockSpec((E, nhid), lambda i: (0, 0)),
            pl.BlockSpec((1, nhid), lambda i: (0, 0)),
            pl.BlockSpec((nhid, E), lambda i: (0, 0)),
            pl.BlockSpec((1, E), lambda i: (0, 0)),
            pl.BlockSpec((1, E), lambda i: (0, 0)),
            pl.BlockSpec((1, E), lambda i: (0, 0)),
        ],
        out_specs=pl.BlockSpec((tm, E), lambda i: (i, 0)),
        compiler_params=pltpu.CompilerParams(
            dimension_semantics=("parallel",),
            vmem_limit_bytes=_VMEM_LIMIT),
    )(xp, w1, b1.reshape(1, nhid), w2, b2.reshape(1, E),
      gamma.reshape(1, E), beta.reshape(1, E))
    return out[:T]


def _mlp_kernel(x_ref, w1_ref, b1_ref, w2_ref, b2_ref, o_ref):
    """Decoder head: Linear -> GELU -> Linear, fused per row tile."""
    h = jnp.dot(x_ref[...].astype(jnp.bfloat16), w1_ref[...].astype(jnp.bfloat16),
                preferred_element_type=jnp.float32) + b1_ref[...]
    h = _gelu(h)
    o_ref[...] = jnp.dot(h.astype(jnp.bfloat16), w2_ref[...].astype(jnp.bfloat16),
                         preferred_element_type=jnp.float32) + b2_ref[...]


def pallas_mlp(x, w1, b1, w2, b2):
    T, E = x.shape
    nhid = w1.shape[1]
    n_out = w2.shape[1]
    n_out_p = _round_up(n_out, 128)          # lane-dense output store
    w2p = _pad_axis(w2, 1, n_out_p)
    b2p = _pad_axis(b2.reshape(1, n_out).astype(jnp.float32), 1, n_out_p)
    Tp, tm = _row_tiling(T)
    xp = _pad_axis(x, 0, Tp)
    out = pl.pallas_call(
        _mlp_kernel,
        out_shape=jax.ShapeDtypeStruct((Tp, n_out_p), jnp.float32),
        grid=(Tp // tm,),
        in_specs=[
            pl.BlockSpec((tm, E), lambda i: (i, 0)),
            pl.BlockSpec((E, nhid), lambda i: (0, 0)),
            pl.BlockSpec((1, nhid), lambda i: (0, 0)),
            pl.BlockSpec((nhid, n_out_p), lambda i: (0, 0)),
            pl.BlockSpec((1, n_out_p), lambda i: (0, 0)),
        ],
        out_specs=pl.BlockSpec((tm, n_out_p), lambda i: (i, 0)),
        compiler_params=pltpu.CompilerParams(
            dimension_semantics=("parallel",),
            vmem_limit_bytes=_VMEM_LIMIT),
    )(xp, w1, b1.reshape(1, nhid), w2p, b2p)
    return out[:T, :n_out]


# ------------------------------- glue (JAX) -------------------------------- #

def encoder_layer_forward(src, p, sep, nhead):
    """One TabPFN TransformerEncoderLayer, post-norm, efficient eval masking."""
    S, B, E = src.shape
    dh = E // nhead
    x2d = src.reshape(S * B, E)

    # fused QKV projection (bf16 MXU inputs, bf16 output -> it only feeds MXUs)
    qkv = pallas_linear(x2d, p["in_proj_w"], p["in_proj_b"],
                        out_dtype=jnp.bfloat16)                     # (S*B, 3E)

    # flash attention reads q/k/v straight from the qkv layout (no transposes)
    attn = pallas_attention(qkv, S, B, nhead, dh, sep)              # (S,B,H,dh) bf16
    attn2d = attn.reshape(S * B, E)                                 # free reshape

    # out_proj + residual + norm1 fused
    h1 = pallas_linear_add_ln(attn2d, x2d, p["out_proj_w"], p["out_proj_b"],
                              p["norm1_g"], p["norm1_b"])

    # lin1 + GELU + lin2 + residual + norm2 fused
    h2 = pallas_ffn_ln(h1, p["lin1_w"], p["lin1_b"], p["lin2_w"], p["lin2_b"],
                       p["norm2_g"], p["norm2_b"])
    return h2.reshape(S, B, E)


def transformer_model_forward(params, x, y, single_eval_pos, nhead):
    """TransformerModel.forward with src=(x, y) and int src_mask (efficient)."""
    S, B, F = x.shape
    E = params["enc_w"].shape[1]
    n_out = params["dec2_w"].shape[1]
    sep = single_eval_pos

    # encoder (Linear) in Pallas
    x_src = pallas_linear(x.reshape(S * B, F), params["enc_w"], params["enc_b"])
    x_src = x_src.reshape(S, B, E)

    # y_encoder is Linear(1, E): a rank-1 broadcast -> VPU, fused with the add
    y_emb = (y[:sep, :, None] * params["yenc_w"][0][None, None, :]
             + params["yenc_b"][None, None, :])
    src = jnp.concatenate([x_src[:sep] + y_emb, x_src[sep:]], axis=0)

    for lp in params["layers"]:
        src = encoder_layer_forward(src, lp, sep, nhead)

    # decoder only on the eval tokens (output[:sep] would be discarded anyway)
    tail = src[sep:].reshape((S - sep) * B, E)
    out = pallas_mlp(tail, params["dec1_w"], params["dec1_b"],
                     params["dec2_w"], params["dec2_b"])
    return out.reshape(S - sep, B, n_out)


# ------------------------------ parameters --------------------------------- #

def init_params(key, num_features, emsize, nhead, nhid, n_out, nlayers):
    keys = iter(jax.random.split(key, 8 + 8 * nlayers))

    def nrm(shape, scale=0.05):
        return scale * jax.random.normal(next(keys), shape, jnp.float32)

    params = {
        "enc_w": nrm((num_features, emsize)),
        "enc_b": nrm((emsize,)),
        "yenc_w": nrm((1, emsize)),
        "yenc_b": nrm((emsize,)),
        "dec1_w": nrm((emsize, nhid)),
        "dec1_b": nrm((nhid,)),
        "dec2_w": nrm((nhid, n_out)),
        "dec2_b": nrm((n_out,)),
        "layers": [],
    }
    for _ in range(nlayers):
        layer = {
            "in_proj_w": nrm((emsize, 3 * emsize)),
            "in_proj_b": nrm((3 * emsize,)),
            # TransformerModel.init_weights() zeroes out_proj and linear2:
            "out_proj_w": jnp.zeros((emsize, emsize), jnp.float32),
            "out_proj_b": jnp.zeros((emsize,), jnp.float32),
            "lin1_w": nrm((emsize, nhid)),
            "lin1_b": nrm((nhid,)),
            "lin2_w": jnp.zeros((nhid, emsize), jnp.float32),
            "lin2_b": jnp.zeros((emsize,), jnp.float32),
            "norm1_g": jnp.ones((emsize,), jnp.float32),
            "norm1_b": jnp.zeros((emsize,), jnp.float32),
            "norm2_g": jnp.ones((emsize,), jnp.float32),
            "norm2_b": jnp.zeros((emsize,), jnp.float32),
        }
        params["layers"].append(layer)
    return params


def cast_params_for_tpu(params):
    """Pre-cast all MXU-facing weight matrices to bf16 (halves weight DMA/VMEM).

    Biases, LayerNorm params and the rank-1 y-encoder weight stay f32 (VPU)."""
    out = dict(params)
    for name in ("enc_w", "dec1_w", "dec2_w"):
        out[name] = params[name].astype(jnp.bfloat16)
    new_layers = []
    for lp in params["layers"]:
        lp = dict(lp)
        for name in ("in_proj_w", "out_proj_w", "lin1_w", "lin2_w"):
            lp[name] = lp[name].astype(jnp.bfloat16)
        new_layers.append(lp)
    out["layers"] = new_layers
    return out


# ---------------------------------- main ----------------------------------- #

if __name__ == "__main__":
    # small shapes consistent with the module's forward
    S, B, F = 8, 2, 4          # seq, batch, num features
    EMSIZE, NHEAD, NHID = 32, 2, 64
    N_OUT, NLAYERS = 2, 2
    SINGLE_EVAL_POS = 4

    key = jax.random.PRNGKey(0)
    kx, ky, kp = jax.random.split(key, 3)
    x = jax.random.normal(kx, (S, B, F), jnp.float32)
    y = jax.random.normal(ky, (S, B), jnp.float32)

    params = cast_params_for_tpu(
        init_params(kp, F, EMSIZE, NHEAD, NHID, N_OUT, NLAYERS))

    fwd = jax.jit(transformer_model_forward, static_argnums=(3, 4))
    out = jax.block_until_ready(fwd(params, x, y, SINGLE_EVAL_POS, NHEAD))

    assert out.shape == (S - SINGLE_EVAL_POS, B, N_OUT), out.shape
    assert bool(jnp.all(jnp.isfinite(out)))
    print("KERNEL_OK")
</pallas_src>

<mosaic_0001>
module attributes {stable_mosaic.version = 11 : i64} {
  func.func @_matmul_kernel(%arg0: i32, %arg1: i32, %arg2: i32, %arg3: memref<16x4xf32, #tpu.memory_space<vmem>>, %arg4: memref<4x128xbf16, #tpu.memory_space<vmem>>, %arg5: memref<1x128xf32, #tpu.memory_space<vmem>>, %arg6: memref<16x128xf32, #tpu.memory_space<vmem>>, %arg7: memref<16x128xf32, #tpu.memory_space<vmem>>) attributes {dimension_semantics = [#tpu.dimension_semantics<parallel>, #tpu.dimension_semantics<parallel>, #tpu.dimension_semantics<arbitrary>], iteration_bounds = array<i64: 1, 1, 1>, scalar_prefetch = 0 : i64, scratch_operands = 1 : i64, tpu.core_type = #tpu.core_type<tc>, window_params = [{transform_indices = @transform_0, window_bounds = array<i64: 16, 4>}, {transform_indices = @transform_1, window_bounds = array<i64: 4, 128>}, {transform_indices = @transform_2, window_bounds = array<i64: 1, 128>}, {transform_indices = @transform_3, window_bounds = array<i64: 16, 128>}]} {
    %c0_i32 = arith.constant 0 : i32
    %0 = arith.cmpi eq, %arg2, %c0_i32 : i32
    %1 = arith.extui %0 : i1 to i32
    %c0_i32_0 = arith.constant 0 : i32
    %2 = arith.cmpi ne, %1, %c0_i32_0 : i32
    scf.if %2 {
      %cst_10 = arith.constant 0.000000e+00 : f32
      %13 = vector.broadcast %cst_10 : f32 to vector<16x128xf32>
      %c0_11 = arith.constant 0 : index
      %c0_12 = arith.constant 0 : index
      %14 = vector.load %arg7[%c0_11, %c0_12] : memref<16x128xf32, #tpu.memory_space<vmem>>, vector<16x128xf32>
      tpu.vector_store %arg7[%c0_11, %c0_12], %13 {strides = array<i32>} : memref<16x128xf32, #tpu.memory_space<vmem>>, vector<16x128xf32>,
    } else {
    }
    %c0 = arith.constant 0 : index
    %c0_1 = arith.constant 0 : index
    %3 = vector.load %arg7[%c0, %c0_1] : memref<16x128xf32, #tpu.memory_space<vmem>>, vector<16x128xf32>
    %c0_2 = arith.constant 0 : index
    %c0_3 = arith.constant 0 : index
    %4 = vector.load %arg3[%c0_2, %c0_3] : memref<16x4xf32, #tpu.memory_space<vmem>>, vector<16x4xf32>
    %5 = arith.truncf %4 : vector<16x4xf32> to vector<16x4xbf16>
    %c0_4 = arith.constant 0 : index
    %c0_5 = arith.constant 0 : index
    %6 = vector.load %arg4[%c0_4, %c0_5] : memref<4x128xbf16, #tpu.memory_space<vmem>>, vector<4x128xbf16>
    %cst = arith.constant dense<0.000000e+00> : vector<16x128xf32>
    %7 = tpu.matmul %5, %6, %cst {dimension_numbers = #tpu.dot_dimension_numbers<[1], [0], [0], [1], [0, 0, 1, 1], [], []>} : vector<16x4xbf16>, vector<4x128xbf16>, vector<16x128xf32> -> vector<16x128xf32>
    %8 = arith.addf %3, %7 : vector<16x128xf32>
    %c0_6 = arith.constant 0 : index
    %c0_7 = arith.constant 0 : index
    %9 = vector.load %arg7[%c0_6, %c0_7] : memref<16x128xf32, #tpu.memory_space<vmem>>, vector<16x128xf32>
    tpu.vector_store %arg7[%c0_6, %c0_7], %8 {strides = array<i32>} : memref<16x128xf32, #tpu.memory_space<vmem>>, vector<16x128xf32>,
    %c0_i32_8 = arith.constant 0 : i32
    %10 = arith.cmpi eq, %arg2, %c0_i32_8 : i32
    %11 = arith.extui %10 : i1 to i32
    %c0_i32_9 = arith.constant 0 : i32
    %12 = arith.cmpi ne, %11, %c0_i32_9 : i32
    scf.if %12 {
      %c0_10 = arith.constant 0 : index
      %c0_11 = arith.constant 0 : index
      %13 = vector.load %arg7[%c0_10, %c0_11] : memref<16x128xf32, #tpu.memory_space<vmem>>, vector<16x128xf32>
      %c0_12 = arith.constant 0 : index
      %c0_13 = arith.constant 0 : index
      %14 = vector.load %arg5[%c0_12, %c0_13] : memref<1x128xf32, #tpu.memory_space<vmem>>, vector<1x128xf32>
      %15 = vector.broadcast %14 : vector<1x128xf32> to vector<16x128xf32>
      %16 = arith.addf %13, %15 : vector<16x128xf32>
      %c0_14 = arith.constant 0 : index
      %c0_15 = arith.constant 0 : index
      %17 = vector.load %arg6[%c0_14, %c0_15] : memref<16x128xf32, #tpu.memory_space<vmem>>, vector<16x128xf32>
      tpu.vector_store %arg6[%c0_14, %c0_15], %16 {strides = array<i32>} : memref<16x128xf32, #tpu.memory_space<vmem>>, vector<16x128xf32>,
    } else {
    }
    return
  }
  func.func @transform_0(%arg0: i32, %arg1: i32, %arg2: i32) -> (i32, i32) {
    %c0_i32 = arith.constant 0 : i32
    return %arg0, %arg2 : i32, i32
  }
  func.func @transform_1(%arg0: i32, %arg1: i32, %arg2: i32) -> (i32, i32) {
    %c0_i32 = arith.constant 0 : i32
    return %arg2, %arg1 : i32, i32
  }
  func.func @transform_2(%arg0: i32, %arg1: i32, %arg2: i32) -> (i32, i32) {
    %c0_i32 = arith.constant 0 : i32
    %c0_i32_0 = arith.constant 0 : i32
    return %c0_i32, %arg1 : i32, i32
  }
  func.func @transform_3(%arg0: i32, %arg1: i32, %arg2: i32) -> (i32, i32) {
    %c0_i32 = arith.constant 0 : i32
    return %arg0, %arg1 : i32, i32
  }
}

module attributes {stable_mosaic.version = 11 : i64} {
  func.func @_matmul_kernel(%arg0: i32, %arg1: i32, %arg2: i32, %arg3: memref<16x32xf32, #tpu.memory_space<vmem>>, %arg4: memref<32x128xbf16, #tpu.memory_space<vmem>>, %arg5: memref<1x128xf32, #tpu.memory_space<vmem>>, %arg6: memref<16x128xbf16, #tpu.memory_space<vmem>>, %arg7: memref<16x128xf32, #tpu.memory_space<vmem>>) attributes {dimension_semantics = [#tpu.dimension_semantics<parallel>, #tpu.dimension_semantics<parallel>, #tpu.dimension_semantics<arbitrary>], iteration_bounds = array<i64: 1, 1, 1>, scalar_prefetch = 0 : i64, scratch_operands = 1 : i64, tpu.core_type = #tpu.core_type<tc>, window_params = [{transform_indices = @transform_0, window_bounds = array<i64: 16, 32>}, {transform_indices = @transform_1, window_bounds = array<i64: 32, 128>}, {transform_indices = @transform_2, window_bounds = array<i64: 1, 128>}, {transform_indices = @transform_3, window_bounds = array<i64: 16, 128>}]} {
    %c0_i32 = arith.constant 0 : i32
    %0 = arith.cmpi eq, %arg2, %c0_i32 : i32
    %1 = arith.extui %0 : i1 to i32
    %c0_i32_0 = arith.constant 0 : i32
    %2 = arith.cmpi ne, %1, %c0_i32_0 : i32
    scf.if %2 {
      %cst_10 = arith.constant 0.000000e+00 : f32
      %13 = vector.broadcast %cst_10 : f32 to vector<16x128xf32>
      %c0_11 = arith.constant 0 : index
      %c0_12 = arith.constant 0 : index
      %14 = vector.load %arg7[%c0_11, %c0_12] : memref<16x128xf32, #tpu.memory_space<vmem>>, vector<16x128xf32>
      tpu.vector_store %arg7[%c0_11, %c0_12], %13 {strides = array<i32>} : memref<16x128xf32, #tpu.memory_space<vmem>>, vector<16x128xf32>,
    } else {
    }
    %c0 = arith.constant 0 : index
    %c0_1 = arith.constant 0 : index
    %3 = vector.load %arg7[%c0, %c0_1] : memref<16x128xf32, #tpu.memory_space<vmem>>, vector<16x128xf32>
    %c0_2 = arith.constant 0 : index
    %c0_3 = arith.constant 0 : index
    %4 = vector.load %arg3[%c0_2, %c0_3] : memref<16x32xf32, #tpu.memory_space<vmem>>, vector<16x32xf32>
    %5 = arith.truncf %4 : vector<16x32xf32> to vector<16x32xbf16>
    %c0_4 = arith.constant 0 : index
    %c0_5 = arith.constant 0 : index
    %6 = vector.load %arg4[%c0_4, %c0_5] : memref<32x128xbf16, #tpu.memory_space<vmem>>, vector<32x128xbf16>
    %cst = arith.constant dense<0.000000e+00> : vector<16x128xf32>
    %7 = tpu.matmul %5, %6, %cst {dimension_numbers = #tpu.dot_dimension_numbers<[1], [0], [0], [1], [0, 0, 1, 1], [], []>} : vector<16x32xbf16>, vector<32x128xbf16>, vector<16x128xf32> -> vector<16x128xf32>
    %8 = arith.addf %3, %7 : vector<16x128xf32>
    %c0_6 = arith.constant 0 : index
    %c0_7 = arith.constant 0 : index
    %9 = vector.load %arg7[%c0_6, %c0_7] : memref<16x128xf32, #tpu.memory_space<vmem>>, vector<16x128xf32>
    tpu.vector_store %arg7[%c0_6, %c0_7], %8 {strides = array<i32>} : memref<16x128xf32, #tpu.memory_space<vmem>>, vector<16x128xf32>,
    %c0_i32_8 = arith.constant 0 : i32
    %10 = arith.cmpi eq, %arg2, %c0_i32_8 : i32
    %11 = arith.extui %10 : i1 to i32
    %c0_i32_9 = arith.constant 0 : i32
    %12 = arith.cmpi ne, %11, %c0_i32_9 : i32
    scf.if %12 {
      %c0_10 = arith.constant 0 : index
      %c0_11 = arith.constant 0 : index
      %13 = vector.load %arg7[%c0_10, %c0_11] : memref<16x128xf32, #tpu.memory_space<vmem>>, vector<16x128xf32>
      %c0_12 = arith.constant 0 : index
      %c0_13 = arith.constant 0 : index
      %14 = vector.load %arg5[%c0_12, %c0_13] : memref<1x128xf32, #tpu.memory_space<vmem>>, vector<1x128xf32>
      %15 = vector.broadcast %14 : vector<1x128xf32> to vector<16x128xf32>
      %16 = arith.addf %13, %15 : vector<16x128xf32>
      %17 = arith.truncf %16 : vector<16x128xf32> to vector<16x128xbf16>
      %c0_14 = arith.constant 0 : index
      %c0_15 = arith.constant 0 : index
      %18 = vector.load %arg6[%c0_14, %c0_15] : memref<16x128xbf16, #tpu.memory_space<vmem>>, vector<16x128xbf16>
      tpu.vector_store %arg6[%c0_14, %c0_15], %17 {strides = array<i32>} : memref<16x128xbf16, #tpu.memory_space<vmem>>, vector<16x128xbf16>,
    } else {
    }
    return
  }
  func.func @transform_0(%arg0: i32, %arg1: i32, %arg2: i32) -> (i32, i32) {
    %c0_i32 = arith.constant 0 : i32
    return %arg0, %arg2 : i32, i32
  }
  func.func @transform_1(%arg0: i32, %arg1: i32, %arg2: i32) -> (i32, i32) {
    %c0_i32 = arith.constant 0 : i32
    return %arg2, %arg1 : i32, i32
  }
  func.func @transform_2(%arg0: i32, %arg1: i32, %arg2: i32) -> (i32, i32) {
    %c0_i32 = arith.constant 0 : i32
    %c0_i32_0 = arith.constant 0 : i32
    return %c0_i32, %arg1 : i32, i32
  }
  func.func @transform_3(%arg0: i32, %arg1: i32, %arg2: i32) -> (i32, i32) {
    %c0_i32 = arith.constant 0 : i32
    return %arg0, %arg1 : i32, i32
  }
}

module attributes {stable_mosaic.version = 11 : i64} {
  func.func @_flash_attn_kernel(%arg0: i32, %arg1: i32, %arg2: i32, %arg3: memref<8x1x1x2x16xbf16, #tpu.memory_space<vmem>>, %arg4: memref<8x1x1x2x16xbf16, #tpu.memory_space<vmem>>, %arg5: memref<8x1x1x2x16xbf16, #tpu.memory_space<vmem>>, %arg6: memref<8x1x2x16xbf16, #tpu.memory_space<vmem>>, %arg7: memref<2x8x1xf32, #tpu.memory_space<vmem>>, %arg8: memref<2x8x1xf32, #tpu.memory_space<vmem>>, %arg9: memref<2x8x16xf32, #tpu.memory_space<vmem>>) attributes {dimension_semantics = [#tpu.dimension_semantics<parallel>, #tpu.dimension_semantics<parallel>, #tpu.dimension_semantics<arbitrary>], iteration_bounds = array<i64: 2, 1, 1>, scalar_prefetch = 0 : i64, scratch_operands = 3 : i64, tpu.core_type = #tpu.core_type<tc>, window_params = [{transform_indices = @transform_0, window_bounds = array<i64: 8, 1, 1, 2, 16>}, {transform_indices = @transform_1, window_bounds = array<i64: 8, 1, 1, 2, 16>}, {transform_indices = @transform_2, window_bounds = array<i64: 8, 1, 1, 2, 16>}, {transform_indices = @transform_3, window_bounds = array<i64: 8, 1, 2, 16>}]} {
    %c0_i32 = arith.constant 0 : i32
    %0 = arith.cmpi eq, %arg2, %c0_i32 : i32
    %1 = arith.extui %0 : i1 to i32
    %c0_i32_0 = arith.constant 0 : i32
    %2 = arith.cmpi ne, %1, %c0_i32_0 : i32
    scf.if %2 {
      %cst_63 = arith.constant -1.000000e+30 : f32
      %108 = vector.broadcast %cst_63 : f32 to vector<2x8x1xf32>
      %c0_64 = arith.constant 0 : index
      %c0_65 = arith.constant 0 : index
      %c0_66 = arith.constant 0 : index
      %109 = vector.load %arg7[%c0_64, %c0_65, %c0_66] : memref<2x8x1xf32, #tpu.memory_space<vmem>>, vector<2x8x1xf32>
      tpu.vector_store %arg7[%c0_64, %c0_65, %c0_66], %108 {strides = array<i32>} : memref<2x8x1xf32, #tpu.memory_space<vmem>>, vector<2x8x1xf32>,
      %cst_67 = arith.constant 0.000000e+00 : f32
      %110 = vector.broadcast %cst_67 : f32 to vector<2x8x1xf32>
      %c0_68 = arith.constant 0 : index
      %c0_69 = arith.constant 0 : index
      %c0_70 = arith.constant 0 : index
      %111 = vector.load %arg8[%c0_68, %c0_69, %c0_70] : memref<2x8x1xf32, #tpu.memory_space<vmem>>, vector<2x8x1xf32>
      tpu.vector_store %arg8[%c0_68, %c0_69, %c0_70], %110 {strides = array<i32>} : memref<2x8x1xf32, #tpu.memory_space<vmem>>, vector<2x8x1xf32>,
      %cst_71 = arith.constant 0.000000e+00 : f32
      %112 = vector.broadcast %cst_71 : f32 to vector<2x8x16xf32>
      %c0_72 = arith.constant 0 : index
      %c0_73 = arith.constant 0 : index
      %c0_74 = arith.constant 0 : index
      %113 = vector.load %arg9[%c0_72, %c0_73, %c0_74] : memref<2x8x16xf32, #tpu.memory_space<vmem>>, vector<2x8x16xf32>
      tpu.vector_store %arg9[%c0_72, %c0_73, %c0_74], %112 {strides = array<i32>} : memref<2x8x16xf32, #tpu.memory_space<vmem>>, vector<2x8x16xf32>,
    } else {
    }
    %c0 = arith.constant 0 : index
    %c0_1 = arith.constant 0 : index
    %c0_2 = arith.constant 0 : index
    %c0_3 = arith.constant 0 : index
    %c0_4 = arith.constant 0 : index
    %3 = vector.load %arg3[%c0, %c0_1, %c0_2, %c0_3, %c0_4] : memref<8x1x1x2x16xbf16, #tpu.memory_space<vmem>>, vector<8x1x1x2x16xbf16>
    %4 = vector.shape_cast %3 : vector<8x1x1x2x16xbf16> to vector<8x2x16xbf16>
    %c0_5 = arith.constant 0 : index
    %c0_6 = arith.constant 0 : index
    %c0_7 = arith.constant 0 : index
    %c0_8 = arith.constant 0 : index
    %c0_9 = arith.constant 0 : index
    %5 = vector.load %arg4[%c0_5, %c0_6, %c0_7, %c0_8, %c0_9] : memref<8x1x1x2x16xbf16, #tpu.memory_space<vmem>>, vector<8x1x1x2x16xbf16>
    %6 = vector.shape_cast %5 : vector<8x1x1x2x16xbf16> to vector<8x2x16xbf16>
    %c0_10 = arith.constant 0 : index
    %c0_11 = arith.constant 0 : index
    %c0_12 = arith.constant 0 : index
    %c0_13 = arith.constant 0 : index
    %c0_14 = arith.constant 0 : index
    %7 = vector.load %arg5[%c0_10, %c0_11, %c0_12, %c0_13, %c0_14] : memref<8x1x1x2x16xbf16, #tpu.memory_space<vmem>>, vector<8x1x1x2x16xbf16>
    %8 = vector.shape_cast %7 : vector<8x1x1x2x16xbf16> to vector<8x2x16xbf16>
    %c8_i32 = arith.constant 8 : i32
    %9 = arith.muli %arg2, %c8_i32 : i32
    %10 = tpu.iota {dimensions = array<i32: 1>} : vector<1x8xi32>
    %11 = vector.broadcast %9 : i32 to vector<1x8xi32>
    %12 = arith.addi %11, %10 : vector<1x8xi32>
    %c4_i32 = arith.constant 4 : i32
    %13 = vector.broadcast %c4_i32 : i32 to vector<1x8xi32>
    %14 = arith.cmpi slt, %12, %13 : vector<1x8xi32>
    %15 = vector.extract_strided_slice %4 {offsets = [0, 0, 0], sizes = [8, 1, 16], strides = [1, 1, 1]} : vector<8x2x16xbf16> to vector<8x1x16xbf16>
    %16 = vector.shape_cast %15 : vector<8x1x16xbf16> to vector<8x16xbf16>
    %cst = arith.constant 2.500000e-01 : bf16
    %17 = vector.broadcast %cst : bf16 to vector<8x16xbf16>
    %18 = arith.mulf %16, %17 : vector<8x16xbf16>
    %19 = vector.extract_strided_slice %6 {offsets = [0, 0, 0], sizes = [8, 1, 16], strides = [1, 1, 1]} : vector<8x2x16xbf16> to vector<8x1x16xbf16>
    %20 = vector.shape_cast %19 : vector<8x1x16xbf16> to vector<8x16xbf16>
    %21 = vector.extract_strided_slice %8 {offsets = [0, 0, 0], sizes = [8, 1, 16], strides = [1, 1, 1]} : vector<8x2x16xbf16> to vector<8x1x16xbf16>
    %22 = vector.shape_cast %21 : vector<8x1x16xbf16> to vector<8x16xbf16>
    %cst_15 = arith.constant dense<0.000000e+00> : vector<8x8xf32>
    %23 = tpu.matmul %18, %20, %cst_15 {dimension_numbers = #tpu.dot_dimension_numbers<[1], [1], [0], [0], [0, 0, 1, 0], [], []>} : vector<8x16xbf16>, vector<8x16xbf16>, vector<8x8xf32> -> vector<8x8xf32>
    %cst_16 = arith.constant -1.000000e+30 : f32
    %24 = vector.shape_cast %14 : vector<1x8xi1> to vector<1x8xi1>
    %25 = vector.broadcast %24 : vector<1x8xi1> to vector<8x8xi1>
    %26 = vector.broadcast %cst_16 : f32 to vector<8x8xf32>
    %27 = arith.select %25, %23, %26 : vector<8x8xi1>, vector<8x8xf32>
    %c0_17 = arith.constant 0 : index
    %c0_18 = arith.constant 0 : index
    %c0_19 = arith.constant 0 : index
    %28 = vector.load %arg7[%c0_17, %c0_18, %c0_19] : memref<2x8x1xf32, #tpu.memory_space<vmem>>, vector<1x8x1xf32>
    %29 = vector.shape_cast %28 : vector<1x8x1xf32> to vector<8x1xf32>
    %cst_20 = arith.constant dense<0xFF800000> : vector<8xf32>
    %30 = vector.multi_reduction <maximumf>, %27, %cst_20 [1] : vector<8x8xf32> to vector<8xf32>
    %31 = vector.shape_cast %30 : vector<8xf32> to vector<8x1xf32>
    %32 = arith.maximumf %29, %31 : vector<8x1xf32>
    %33 = arith.subf %29, %32 : vector<8x1xf32>
    %34 = math.exp %33 : vector<8x1xf32>
    %35 = vector.broadcast %32 : vector<8x1xf32> to vector<8x8xf32>
    %36 = arith.subf %27, %35 : vector<8x8xf32>
    %37 = math.exp %36 : vector<8x8xf32>
    %c0_21 = arith.constant 0 : index
    %c0_22 = arith.constant 0 : index
    %c0_23 = arith.constant 0 : index
    %38 = vector.load %arg8[%c0_21, %c0_22, %c0_23] : memref<2x8x1xf32, #tpu.memory_space<vmem>>, vector<1x8x1xf32>
    %39 = vector.shape_cast %38 : vector<1x8x1xf32> to vector<8x1xf32>
    %40 = arith.mulf %34, %39 : vector<8x1xf32>
    %cst_24 = arith.constant dense<0.000000e+00> : vector<8xf32>
    %41 = vector.multi_reduction <add>, %37, %cst_24 [1] : vector<8x8xf32> to vector<8xf32>
    %42 = vector.shape_cast %41 : vector<8xf32> to vector<8x1xf32>
    %43 = arith.addf %40, %42 : vector<8x1xf32>
    %c0_25 = arith.constant 0 : index
    %c0_26 = arith.constant 0 : index
    %c0_27 = arith.constant 0 : index
    %44 = vector.load %arg8[%c0_25, %c0_26, %c0_27] : memref<2x8x1xf32, #tpu.memory_space<vmem>>, vector<1x8x1xf32>
    %45 = vector.shape_cast %44 : vector<1x8x1xf32> to vector<8x1xf32>
    %46 = vector.shape_cast %43 : vector<8x1xf32> to vector<1x8x1xf32>
    tpu.vector_store %arg8[%c0_25, %c0_26, %c0_27], %46 {strides = array<i32>} : memref<2x8x1xf32, #tpu.memory_space<vmem>>, vector<1x8x1xf32>,
    %c0_28 = arith.constant 0 : index
    %c0_29 = arith.constant 0 : index
    %c0_30 = arith.constant 0 : index
    %47 = vector.load %arg9[%c0_28, %c0_29, %c0_30] : memref<2x8x16xf32, #tpu.memory_space<vmem>>, vector<1x8x16xf32>
    %48 = vector.shape_cast %47 : vector<1x8x16xf32> to vector<8x16xf32>
    %49 = vector.broadcast %34 : vector<8x1xf32> to vector<8x16xf32>
    %50 = arith.mulf %49, %48 : vector<8x16xf32>
    %51 = arith.truncf %37 : vector<8x8xf32> to vector<8x8xbf16>
    %cst_31 = arith.constant dense<0.000000e+00> : vector<8x16xf32>
    %52 = tpu.matmul %51, %22, %cst_31 {dimension_numbers = #tpu.dot_dimension_numbers<[1], [0], [0], [1], [0, 0, 1, 1], [], []>} : vector<8x8xbf16>, vector<8x16xbf16>, vector<8x16xf32> -> vector<8x16xf32>
    %53 = arith.addf %50, %52 : vector<8x16xf32>
    %c0_32 = arith.constant 0 : index
    %c0_33 = arith.constant 0 : index
    %c0_34 = arith.constant 0 : index
    %54 = vector.load %arg9[%c0_32, %c0_33, %c0_34] : memref<2x8x16xf32, #tpu.memory_space<vmem>>, vector<1x8x16xf32>
    %55 = vector.shape_cast %54 : vector<1x8x16xf32> to vector<8x16xf32>
    %56 = vector.shape_cast %53 : vector<8x16xf32> to vector<1x8x16xf32>
    tpu.vector_store %arg9[%c0_32, %c0_33, %c0_34], %56 {strides = array<i32>} : memref<2x8x16xf32, #tpu.memory_space<vmem>>, vector<1x8x16xf32>,
    %c0_35 = arith.constant 0 : index
    %c0_36 = arith.constant 0 : index
    %c0_37 = arith.constant 0 : index
    %57 = vector.load %arg7[%c0_35, %c0_36, %c0_37] : memref<2x8x1xf32, #tpu.memory_space<vmem>>, vector<1x8x1xf32>
    %58 = vector.shape_cast %57 : vector<1x8x1xf32> to vector<8x1xf32>
    %59 = vector.shape_cast %32 : vector<8x1xf32> to vector<1x8x1xf32>
    tpu.vector_store %arg7[%c0_35, %c0_36, %c0_37], %59 {strides = array<i32>} : memref<2x8x1xf32, #tpu.memory_space<vmem>>, vector<1x8x1xf32>,
    %60 = vector.extract_strided_slice %4 {offsets = [0, 1, 0], sizes = [8, 1, 16], strides = [1, 1, 1]} : vector<8x2x16xbf16> to vector<8x1x16xbf16>
    %61 = vector.shape_cast %60 : vector<8x1x16xbf16> to vector<8x16xbf16>
    %cst_38 = arith.constant 2.500000e-01 : bf16
    %62 = vector.broadcast %cst_38 : bf16 to vector<8x16xbf16>
    %63 = arith.mulf %61, %62 : vector<8x16xbf16>
    %64 = vector.extract_strided_slice %6 {offsets = [0, 1, 0], sizes = [8, 1, 16], strides = [1, 1, 1]} : vector<8x2x16xbf16> to vector<8x1x16xbf16>
    %65 = vector.shape_cast %64 : vector<8x1x16xbf16> to vector<8x16xbf16>
    %66 = vector.extract_strided_slice %8 {offsets = [0, 1, 0], sizes = [8, 1, 16], strides = [1, 1, 1]} : vector<8x2x16xbf16> to vector<8x1x16xbf16>
    %67 = vector.shape_cast %66 : vector<8x1x16xbf16> to vector<8x16xbf16>
    %cst_39 = arith.constant dense<0.000000e+00> : vector<8x8xf32>
    %68 = tpu.matmul %63, %65, %cst_39 {dimension_numbers = #tpu.dot_dimension_numbers<[1], [1], [0], [0], [0, 0, 1, 0], [], []>} : vector<8x16xbf16>, vector<8x16xbf16>, vector<8x8xf32> -> vector<8x8xf32>
    %cst_40 = arith.constant -1.000000e+30 : f32
    %69 = vector.shape_cast %14 : vector<1x8xi1> to vector<1x8xi1>
    %70 = vector.broadcast %69 : vector<1x8xi1> to vector<8x8xi1>
    %71 = vector.broadcast %cst_40 : f32 to vector<8x8xf32>
    %72 = arith.select %70, %68, %71 : vector<8x8xi1>, vector<8x8xf32>
    %c1 = arith.constant 1 : index
    %c0_41 = arith.constant 0 : index
    %c0_42 = arith.constant 0 : index
    %73 = vector.load %arg7[%c1, %c0_41, %c0_42] : memref<2x8x1xf32, #tpu.memory_space<vmem>>, vector<1x8x1xf32>
    %74 = vector.shape_cast %73 : vector<1x8x1xf32> to vector<8x1xf32>
    %cst_43 = arith.constant dense<0xFF800000> : vector<8xf32>
    %75 = vector.multi_reduction <maximumf>, %72, %cst_43 [1] : vector<8x8xf32> to vector<8xf32>
    %76 = vector.shape_cast %75 : vector<8xf32> to vector<8x1xf32>
    %77 = arith.maximumf %74, %76 : vector<8x1xf32>
    %78 = arith.subf %74, %77 : vector<8x1xf32>
    %79 = math.exp %78 : vector<8x1xf32>
    %80 = vector.broadcast %77 : vector<8x1xf32> to vector<8x8xf32>
    %81 = arith.subf %72, %80 : vector<8x8xf32>
    %82 = math.exp %81 : vector<8x8xf32>
    %c1_44 = arith.constant 1 : index
    %c0_45 = arith.constant 0 : index
    %c0_46 = arith.constant 0 : index
    %83 = vector.load %arg8[%c1_44, %c0_45, %c0_46] : memref<2x8x1xf32, #tpu.memory_space<vmem>>, vector<1x8x1xf32>
    %84 = vector.shape_cast %83 : vector<1x8x1xf32> to vector<8x1xf32>
    %85 = arith.mulf %79, %84 : vector<8x1xf32>
    %cst_47 = arith.constant dense<0.000000e+00> : vector<8xf32>
    %86 = vector.multi_reduction <add>, %82, %cst_47 [1] : vector<8x8xf32> to vector<8xf32>
    %87 = vector.shape_cast %86 : vector<8xf32> to vector<8x1xf32>
    %88 = arith.addf %85, %87 : vector<8x1xf32>
    %c1_48 = arith.constant 1 : index
    %c0_49 = arith.constant 0 : index
    %c0_50 = arith.constant 0 : index
    %89 = vector.load %arg8[%c1_48, %c0_49, %c0_50] : memref<2x8x1xf32, #tpu.memory_space<vmem>>, vector<1x8x1xf32>
    %90 = vector.shape_cast %89 : vector<1x8x1xf32> to vector<8x1xf32>
    %91 = vector.shape_cast %88 : vector<8x1xf32> to vector<1x8x1xf32>
    tpu.vector_store %arg8[%c1_48, %c0_49, %c0_50], %91 {strides = array<i32>} : memref<2x8x1xf32, #tpu.memory_space<vmem>>, vector<1x8x1xf32>,
    %c1_51 = arith.constant 1 : index
    %c0_52 = arith.constant 0 : index
    %c0_53 = arith.constant 0 : index
    %92 = vector.load %arg9[%c1_51, %c0_52, %c0_53] : memref<2x8x16xf32, #tpu.memory_space<vmem>>, vector<1x8x16xf32>
    %93 = vector.shape_cast %92 : vector<1x8x16xf32> to vector<8x16xf32>
    %94 = vector.broadcast %79 : vector<8x1xf32> to vector<8x16xf32>
    %95 = arith.mulf %94, %93 : vector<8x16xf32>
    %96 = arith.truncf %82 : vector<8x8xf32> to vector<8x8xbf16>
    %cst_54 = arith.constant dense<0.000000e+00> : vector<8x16xf32>
    %97 = tpu.matmul %96, %67, %cst_54 {dimension_numbers = #tpu.dot_dimension_numbers<[1], [0], [0], [1], [0, 0, 1, 1], [], []>} : vector<8x8xbf16>, vector<8x16xbf16>, vector<8x16xf32> -> vector<8x16xf32>
    %98 = arith.addf %95, %97 : vector<8x16xf32>
    %c1_55 = arith.constant 1 : index
    %c0_56 = arith.constant 0 : index
    %c0_57 = arith.constant 0 : index
    %99 = vector.load %arg9[%c1_55, %c0_56, %c0_57] : memref<2x8x16xf32, #tpu.memory_space<vmem>>, vector<1x8x16xf32>
    %100 = vector.shape_cast %99 : vector<1x8x16xf32> to vector<8x16xf32>
    %101 = vector.shape_cast %98 : vector<8x16xf32> to vector<1x8x16xf32>
    tpu.vector_store %arg9[%c1_55, %c0_56, %c0_57], %101 {strides = array<i32>} : memref<2x8x16xf32, #tpu.memory_space<vmem>>, vector<1x8x16xf32>,
    %c1_58 = arith.constant 1 : index
    %c0_59 = arith.constant 0 : index
    %c0_60 = arith.constant 0 : index
    %102 = vector.load %arg7[%c1_58, %c0_59, %c0_60] : memref<2x8x1xf32, #tpu.memory_space<vmem>>, vector<1x8x1xf32>
    %103 = vector.shape_cast %102 : vector<1x8x1xf32> to vector<8x1xf32>
    %104 = vector.shape_cast %77 : vector<8x1xf32> to vector<1x8x1xf32>
    tpu.vector_store %arg7[%c1_58, %c0_59, %c0_60], %104 {strides = array<i32>} : memref<2x8x1xf32, #tpu.memory_space<vmem>>, vector<1x8x1xf32>,
    %c0_i32_61 = arith.constant 0 : i32
    %105 = arith.cmpi eq, %arg2, %c0_i32_61 : i32
    %106 = arith.extui %105 : i1 to i32
    %c0_i32_62 = arith.constant 0 : i32
    %107 = arith.cmpi ne, %106, %c0_i32_62 : i32
    scf.if %107 {
      %c0_63 = arith.constant 0 : index
      %c0_64 = arith.constant 0 : index
      %c0_65 = arith.constant 0 : index
      %108 = vector.load %arg8[%c0_63, %c0_64, %c0_65] : memref<2x8x1xf32, #tpu.memory_space<vmem>>, vector<1x8x1xf32>
      %109 = vector.shape_cast %108 : vector<1x8x1xf32> to vector<8x1xf32>
      %110 = tpu.reciprocal %109 {approx = true} : vector<8x1xf32> -> vector<8x1xf32>
      %c0_66 = arith.constant 0 : index
      %c0_67 = arith.constant 0 : index
      %c0_68 = arith.constant 0 : index
      %111 = vector.load %arg9[%c0_66, %c0_67, %c0_68] : memref<2x8x16xf32, #tpu.memory_space<vmem>>, vector<1x8x16xf32>
      %112 = vector.shape_cast %111 : vector<1x8x16xf32> to vector<8x16xf32>
      %113 = vector.broadcast %110 : vector<8x1xf32> to vector<8x16xf32>
      %114 = arith.mulf %112, %113 : vector<8x16xf32>
      %115 = arith.truncf %114 : vector<8x16xf32> to vector<8x16xbf16>
      %c0_69 = arith.constant 0 : index
      %c0_70 = arith.constant 0 : index
      %c0_71 = arith.constant 0 : index
      %c0_72 = arith.constant 0 : index
      %116 = vector.load %arg6[%c0_69, %c0_70, %c0_71, %c0_72] : memref<8x1x2x16xbf16, #tpu.memory_space<vmem>>, vector<8x1x1x16xbf16>
      %117 = vector.shape_cast %116 : vector<8x1x1x16xbf16> to vector<8x16xbf16>
      %118 = vector.shape_cast %115 : vector<8x16xbf16> to vector<8x1x1x16xbf16>
      tpu.vector_store %arg6[%c0_69, %c0_70, %c0_71, %c0_72], %118 {strides = array<i32>} : memref<8x1x2x16xbf16, #tpu.memory_space<vmem>>, vector<8x1x1x16xbf16>,
      %c1_73 = arith.constant 1 : index
      %c0_74 = arith.constant 0 : index
      %c0_75 = arith.constant 0 : index
      %119 = vector.load %arg8[%c1_73, %c0_74, %c0_75] : memref<2x8x1xf32, #tpu.memory_space<vmem>>, vector<1x8x1xf32>
      %120 = vector.shape_cast %119 : vector<1x8x1xf32> to vector<8x1xf32>
      %121 = tpu.reciprocal %120 {approx = true} : vector<8x1xf32> -> vector<8x1xf32>
      %c1_76 = arith.constant 1 : index
      %c0_77 = arith.constant 0 : index
      %c0_78 = arith.constant 0 : index
      %122 = vector.load %arg9[%c1_76, %c0_77, %c0_78] : memref<2x8x16xf32, #tpu.memory_space<vmem>>, vector<1x8x16xf32>
      %123 = vector.shape_cast %122 : vector<1x8x16xf32> to vector<8x16xf32>
      %124 = vector.broadcast %121 : vector<8x1xf32> to vector<8x16xf32>
      %125 = arith.mulf %123, %124 : vector<8x16xf32>
      %126 = arith.truncf %125 : vector<8x16xf32> to vector<8x16xbf16>
      %c0_79 = arith.constant 0 : index
      %c0_80 = arith.constant 0 : index
      %c1_81 = arith.constant 1 : index
      %c0_82 = arith.constant 0 : index
      %127 = vector.load %arg6[%c0_79, %c0_80, %c1_81, %c0_82] : memref<8x1x2x16xbf16, #tpu.memory_space<vmem>>, vector<8x1x1x16xbf16>
      %128 = vector.shape_cast %127 : vector<8x1x1x16xbf16> to vector<8x16xbf16>
      %129 = vector.shape_cast %126 : vector<8x16xbf16> to vector<8x1x1x16xbf16>
      tpu.vector_store %arg6[%c0_79, %c0_80, %c1_81, %c0_82], %129 {strides = array<i32>} : memref<8x1x2x16xbf16, #tpu.memory_space<vmem>>, vector<8x1x1x16xbf16>,
    } else {
    }
    return
  }
  func.func @transform_0(%arg0: i32, %arg1: i32, %arg2: i32) -> (i32, i32, i32, i32, i32) {
    %c0_i32 = arith.constant 0 : i32
    %c0_i32_0 = arith.constant 0 : i32
    %c0_i32_1 = arith.constant 0 : i32
    %c0_i32_2 = arith.constant 0 : i32
    return %arg1, %arg0, %c0_i32, %c0_i32_0, %c0_i32_1 : i32, i32, i32, i32, i32
  }
  func.func @transform_1(%arg0: i32, %arg1: i32, %arg2: i32) -> (i32, i32, i32, i32, i32) {
    %c1_i32 = arith.constant 1 : i32
    %c0_i32 = arith.constant 0 : i32
    %c0_i32_0 = arith.constant 0 : i32
    %c0_i32_1 = arith.constant 0 : i32
    return %arg2, %arg0, %c1_i32, %c0_i32, %c0_i32_0 : i32, i32, i32, i32, i32
  }
  func.func @transform_2(%arg0: i32, %arg1: i32, %arg2: i32) -> (i32, i32, i32, i32, i32) {
    %c2_i32 = arith.constant 2 : i32
    %c0_i32 = arith.constant 0 : i32
    %c0_i32_0 = arith.constant 0 : i32
    %c0_i32_1 = arith.constant 0 : i32
    return %arg2, %arg0, %c2_i32, %c0_i32, %c0_i32_0 : i32, i32, i32, i32, i32
  }
  func.func @transform_3(%arg0: i32, %arg1: i32, %arg2: i32) -> (i32, i32, i32, i32) {
    %c0_i32 = arith.constant 0 : i32
    %c0_i32_0 = arith.constant 0 : i32
    %c0_i32_1 = arith.constant 0 : i32
    return %arg1, %arg0, %c0_i32, %c0_i32_0 : i32, i32, i32, i32
  }
}

module attributes {stable_mosaic.version = 11 : i64} {
  func.func @_linear_add_ln_kernel(%arg0: i32, %arg1: memref<16x32xbf16, #tpu.memory_space<vmem>>, %arg2: memref<16x32xf32, #tpu.memory_space<vmem>>, %arg3: memref<32x32xbf16, #tpu.memory_space<vmem>>, %arg4: memref<1x32xf32, #tpu.memory_space<vmem>>, %arg5: memref<1x32xf32, #tpu.memory_space<vmem>>, %arg6: memref<1x32xf32, #tpu.memory_space<vmem>>, %arg7: memref<16x32xf32, #tpu.memory_space<vmem>>) attributes {dimension_semantics = [#tpu.dimension_semantics<parallel>], iteration_bounds = array<i64: 1>, scalar_prefetch = 0 : i64, scratch_operands = 0 : i64, tpu.core_type = #tpu.core_type<tc>, window_params = [{transform_indices = @transform_0, window_bounds = array<i64: 16, 32>}, {transform_indices = @transform_1, window_bounds = array<i64: 16, 32>}, {pipeline_mode = #tpu.pipeline_mode<synchronous>, transform_indices = @transform_2, window_bounds = array<i64: 32, 32>}, {pipeline_mode = #tpu.pipeline_mode<synchronous>, transform_indices = @transform_3, window_bounds = array<i64: 1, 32>}, {pipeline_mode = #tpu.pipeline_mode<synchronous>, transform_indices = @transform_4, window_bounds = array<i64: 1, 32>}, {pipeline_mode = #tpu.pipeline_mode<synchronous>, transform_indices = @transform_5, window_bounds = array<i64: 1, 32>}, {transform_indices = @transform_6, window_bounds = array<i64: 16, 32>}]} {
    %c0 = arith.constant 0 : index
    %c0_0 = arith.constant 0 : index
    %0 = vector.load %arg1[%c0, %c0_0] : memref<16x32xbf16, #tpu.memory_space<vmem>>, vector<16x32xbf16>
    %c0_1 = arith.constant 0 : index
    %c0_2 = arith.constant 0 : index
    %1 = vector.load %arg3[%c0_1, %c0_2] : memref<32x32xbf16, #tpu.memory_space<vmem>>, vector<32x32xbf16>
    %cst = arith.constant dense<0.000000e+00> : vector<16x32xf32>
    %2 = tpu.matmul %0, %1, %cst {dimension_numbers = #tpu.dot_dimension_numbers<[1], [0], [0], [1], [0, 0, 1, 1], [], []>} : vector<16x32xbf16>, vector<32x32xbf16>, vector<16x32xf32> -> vector<16x32xf32>
    %c0_3 = arith.constant 0 : index
    %c0_4 = arith.constant 0 : index
    %3 = vector.load %arg4[%c0_3, %c0_4] : memref<1x32xf32, #tpu.memory_space<vmem>>, vector<1x32xf32>
    %4 = vector.broadcast %3 : vector<1x32xf32> to vector<16x32xf32>
    %5 = arith.addf %2, %4 : vector<16x32xf32>
    %c0_5 = arith.constant 0 : index
    %c0_6 = arith.constant 0 : index
    %6 = vector.load %arg2[%c0_5, %c0_6] : memref<16x32xf32, #tpu.memory_space<vmem>>, vector<16x32xf32>
    %7 = arith.addf %5, %6 : vector<16x32xf32>
    %cst_7 = arith.constant dense<0.000000e+00> : vector<16xf32>
    %8 = vector.multi_reduction <add>, %7, %cst_7 [1] : vector<16x32xf32> to vector<16xf32>
    %9 = vector.shape_cast %8 : vector<16xf32> to vector<16x1xf32>
    %cst_8 = arith.constant 3.200000e+01 : f32
    %10 = vector.broadcast %cst_8 : f32 to vector<16x1xf32>
    %11 = arith.divf %9, %10 : vector<16x1xf32>
    %12 = vector.broadcast %11 : vector<16x1xf32> to vector<16x32xf32>
    %13 = arith.subf %7, %12 : vector<16x32xf32>
    %14 = arith.mulf %13, %13 : vector<16x32xf32>
    %cst_9 = arith.constant dense<0.000000e+00> : vector<16xf32>
    %15 = vector.multi_reduction <add>, %14, %cst_9 [1] : vector<16x32xf32> to vector<16xf32>
    %16 = vector.shape_cast %15 : vector<16xf32> to vector<16x1xf32>
    %cst_10 = arith.constant 3.200000e+01 : f32
    %17 = vector.broadcast %cst_10 : f32 to vector<16x1xf32>
    %18 = arith.divf %16, %17 : vector<16x1xf32>
    %19 = vector.broadcast %11 : vector<16x1xf32> to vector<16x32xf32>
    %20 = arith.subf %7, %19 : vector<16x32xf32>
    %cst_11 = arith.constant 9.99999974E-6 : f32
    %21 = vector.broadcast %cst_11 : f32 to vector<16x1xf32>
    %22 = arith.addf %18, %21 : vector<16x1xf32>
    %23 = math.rsqrt %22 : vector<16x1xf32>
    %24 = vector.broadcast %23 : vector<16x1xf32> to vector<16x32xf32>
    %25 = arith.mulf %20, %24 : vector<16x32xf32>
    %c0_12 = arith.constant 0 : index
    %c0_13 = arith.constant 0 : index
    %26 = vector.load %arg5[%c0_12, %c0_13] : memref<1x32xf32, #tpu.memory_space<vmem>>, vector<1x32xf32>
    %27 = vector.broadcast %26 : vector<1x32xf32> to vector<16x32xf32>
    %28 = arith.mulf %25, %27 : vector<16x32xf32>
    %c0_14 = arith.constant 0 : index
    %c0_15 = arith.constant 0 : index
    %29 = vector.load %arg6[%c0_14, %c0_15] : memref<1x32xf32, #tpu.memory_space<vmem>>, vector<1x32xf32>
    %30 = vector.broadcast %29 : vector<1x32xf32> to vector<16x32xf32>
    %31 = arith.addf %28, %30 : vector<16x32xf32>
    %c0_16 = arith.constant 0 : index
    %c0_17 = arith.constant 0 : index
    %32 = vector.load %arg7[%c0_16, %c0_17] : memref<16x32xf32, #tpu.memory_space<vmem>>, vector<16x32xf32>
    tpu.vector_store %arg7[%c0_16, %c0_17], %31 {strides = array<i32>} : memref<16x32xf32, #tpu.memory_space<vmem>>, vector<16x32xf32>,
    return
  }
  func.func @transform_0(%arg0: i32) -> (i32, i32) {
    %c0_i32 = arith.constant 0 : i32
    %c0_i32_0 = arith.constant 0 : i32
    return %arg0, %c0_i32 : i32, i32
  }
  func.func @transform_1(%arg0: i32) -> (i32, i32) {
    %c0_i32 = arith.constant 0 : i32
    %c0_i32_0 = arith.constant 0 : i32
    return %arg0, %c0_i32 : i32, i32
  }
  func.func @transform_2(%arg0: i32) -> (i32, i32) {
    %c0_i32 = arith.constant 0 : i32
    %c0_i32_0 = arith.constant 0 : i32
    %c0_i32_1 = arith.constant 0 : i32
    return %c0_i32, %c0_i32_0 : i32, i32
  }
  func.func @transform_3(%arg0: i32) -> (i32, i32) {
    %c0_i32 = arith.constant 0 : i32
    %c0_i32_0 = arith.constant 0 : i32
    %c0_i32_1 = arith.constant 0 : i32
    return %c0_i32, %c0_i32_0 : i32, i32
  }
  func.func @transform_4(%arg0: i32) -> (i32, i32) {
    %c0_i32 = arith.constant 0 : i32
    %c0_i32_0 = arith.constant 0 : i32
    %c0_i32_1 = arith.constant 0 : i32
    return %c0_i32, %c0_i32_0 : i32, i32
  }
  func.func @transform_5(%arg0: i32) -> (i32, i32) {
    %c0_i32 = arith.constant 0 : i32
    %c0_i32_0 = arith.constant 0 : i32
    %c0_i32_1 = arith.constant 0 : i32
    return %c0_i32, %c0_i32_0 : i32, i32
  }
  func.func @transform_6(%arg0: i32) -> (i32, i32) {
    %c0_i32 = arith.constant 0 : i32
    %c0_i32_0 = arith.constant 0 : i32
    return %arg0, %c0_i32 : i32, i32
  }
}

module attributes {stable_mosaic.version = 11 : i64} {
  func.func @_ffn_ln_kernel(%arg0: i32, %arg1: memref<16x32xf32, #tpu.memory_space<vmem>>, %arg2: memref<32x64xbf16, #tpu.memory_space<vmem>>, %arg3: memref<1x64xf32, #tpu.memory_space<vmem>>, %arg4: memref<64x32xbf16, #tpu.memory_space<vmem>>, %arg5: memref<1x32xf32, #tpu.memory_space<vmem>>, %arg6: memref<1x32xf32, #tpu.memory_space<vmem>>, %arg7: memref<1x32xf32, #tpu.memory_space<vmem>>, %arg8: memref<16x32xf32, #tpu.memory_space<vmem>>) attributes {dimension_semantics = [#tpu.dimension_semantics<parallel>], iteration_bounds = array<i64: 1>, scalar_prefetch = 0 : i64, scratch_operands = 0 : i64, tpu.core_type = #tpu.core_type<tc>, window_params = [{transform_indices = @transform_0, window_bounds = array<i64: 16, 32>}, {pipeline_mode = #tpu.pipeline_mode<synchronous>, transform_indices = @transform_1, window_bounds = array<i64: 32, 64>}, {pipeline_mode = #tpu.pipeline_mode<synchronous>, transform_indices = @transform_2, window_bounds = array<i64: 1, 64>}, {pipeline_mode = #tpu.pipeline_mode<synchronous>, transform_indices = @transform_3, window_bounds = array<i64: 64, 32>}, {pipeline_mode = #tpu.pipeline_mode<synchronous>, transform_indices = @transform_4, window_bounds = array<i64: 1, 32>}, {pipeline_mode = #tpu.pipeline_mode<synchronous>, transform_indices = @transform_5, window_bounds = array<i64: 1, 32>}, {pipeline_mode = #tpu.pipeline_mode<synchronous>, transform_indices = @transform_6, window_bounds = array<i64: 1, 32>}, {transform_indices = @transform_7, window_bounds = array<i64: 16, 32>}]} {
    %c0 = arith.constant 0 : index
    %c0_0 = arith.constant 0 : index
    %0 = vector.load %arg1[%c0, %c0_0] : memref<16x32xf32, #tpu.memory_space<vmem>>, vector<16x32xf32>
    %1 = arith.truncf %0 : vector<16x32xf32> to vector<16x32xbf16>
    %c0_1 = arith.constant 0 : index
    %c0_2 = arith.constant 0 : index
    %2 = vector.load %arg2[%c0_1, %c0_2] : memref<32x64xbf16, #tpu.memory_space<vmem>>, vector<32x64xbf16>
    %cst = arith.constant dense<0.000000e+00> : vector<16x64xf32>
    %3 = tpu.matmul %1, %2, %cst {dimension_numbers = #tpu.dot_dimension_numbers<[1], [0], [0], [1], [0, 0, 1, 1], [], []>} : vector<16x32xbf16>, vector<32x64xbf16>, vector<16x64xf32> -> vector<16x64xf32>
    %c0_3 = arith.constant 0 : index
    %c0_4 = arith.constant 0 : index
    %4 = vector.load %arg3[%c0_3, %c0_4] : memref<1x64xf32, #tpu.memory_space<vmem>>, vector<1x64xf32>
    %5 = vector.broadcast %4 : vector<1x64xf32> to vector<16x64xf32>
    %6 = arith.addf %3, %5 : vector<16x64xf32>
    %cst_5 = arith.constant 5.000000e-01 : f32
    %7 = vector.broadcast %cst_5 : f32 to vector<16x64xf32>
    %8 = arith.mulf %7, %6 : vector<16x64xf32>
    %cst_6 = arith.constant 0.707106769 : f32
    %9 = vector.broadcast %cst_6 : f32 to vector<16x64xf32>
    %10 = arith.mulf %6, %9 : vector<16x64xf32>
    %cst_7 = arith.constant 0.000000e+00 : f32
    %11 = vector.broadcast %cst_7 : f32 to vector<16x64xf32>
    %12 = arith.cmpf oge, %10, %11 : vector<16x64xf32>
    %cst_8 = arith.constant 0.000000e+00 : f32
    %13 = vector.broadcast %cst_8 : f32 to vector<16x64xf32>
    %14 = arith.subf %13, %10 : vector<16x64xf32>
    %15 = arith.select %12, %10, %14 : vector<16x64xi1>, vector<16x64xf32>
    %cst_9 = arith.constant 0.327591091 : f32
    %16 = vector.broadcast %cst_9 : f32 to vector<16x64xf32>
    %17 = arith.mulf %16, %15 : vector<16x64xf32>
    %cst_10 = arith.constant 1.000000e+00 : f32
    %18 = vector.broadcast %cst_10 : f32 to vector<16x64xf32>
    %19 = arith.addf %18, %17 : vector<16x64xf32>
    %cst_11 = arith.constant 1.000000e+00 : f32
    %20 = vector.broadcast %cst_11 : f32 to vector<16x64xf32>
    %21 = arith.divf %20, %19 : vector<16x64xf32>
    %cst_12 = arith.constant 1.06140542 : f32
    %22 = vector.broadcast %cst_12 : f32 to vector<16x64xf32>
    %23 = arith.mulf %21, %22 : vector<16x64xf32>
    %cst_13 = arith.constant -1.45315206 : f32
    %24 = vector.broadcast %cst_13 : f32 to vector<16x64xf32>
    %25 = arith.addf %24, %23 : vector<16x64xf32>
    %26 = arith.mulf %21, %25 : vector<16x64xf32>
    %cst_14 = arith.constant 1.42141378 : f32
    %27 = vector.broadcast %cst_14 : f32 to vector<16x64xf32>
    %28 = arith.addf %27, %26 : vector<16x64xf32>
    %29 = arith.mulf %21, %28 : vector<16x64xf32>
    %cst_15 = arith.constant -0.284496725 : f32
    %30 = vector.broadcast %cst_15 : f32 to vector<16x64xf32>
    %31 = arith.addf %30, %29 : vector<16x64xf32>
    %32 = arith.mulf %21, %31 : vector<16x64xf32>
    %cst_16 = arith.constant 0.254829586 : f32
    %33 = vector.broadcast %cst_16 : f32 to vector<16x64xf32>
    %34 = arith.addf %33, %32 : vector<16x64xf32>
    %35 = arith.mulf %21, %34 : vector<16x64xf32>
    %cst_17 = arith.constant 0.000000e+00 : f32
    %36 = vector.broadcast %cst_17 : f32 to vector<16x64xf32>
    %37 = arith.subf %36, %15 : vector<16x64xf32>
    %38 = arith.mulf %37, %15 : vector<16x64xf32>
    %39 = math.exp %38 : vector<16x64xf32>
    %40 = arith.mulf %35, %39 : vector<16x64xf32>
    %cst_18 = arith.constant 1.000000e+00 : f32
    %41 = vector.broadcast %cst_18 : f32 to vector<16x64xf32>
    %42 = arith.subf %41, %40 : vector<16x64xf32>
    %cst_19 = arith.constant 0.000000e+00 : f32
    %43 = vector.broadcast %cst_19 : f32 to vector<16x64xf32>
    %44 = arith.cmpf oge, %10, %43 : vector<16x64xf32>
    %cst_20 = arith.constant 0.000000e+00 : f32
    %45 = vector.broadcast %cst_20 : f32 to vector<16x64xf32>
    %46 = arith.subf %45, %42 : vector<16x64xf32>
    %47 = arith.select %44, %42, %46 : vector<16x64xi1>, vector<16x64xf32>
    %cst_21 = arith.constant 1.000000e+00 : f32
    %48 = vector.broadcast %cst_21 : f32 to vector<16x64xf32>
    %49 = arith.addf %48, %47 : vector<16x64xf32>
    %50 = arith.mulf %8, %49 : vector<16x64xf32>
    %51 = arith.truncf %50 : vector<16x64xf32> to vector<16x64xbf16>
    %c0_22 = arith.constant 0 : index
    %c0_23 = arith.constant 0 : index
    %52 = vector.load %arg4[%c0_22, %c0_23] : memref<64x32xbf16, #tpu.memory_space<vmem>>, vector<64x32xbf16>
    %cst_24 = arith.constant dense<0.000000e+00> : vector<16x32xf32>
    %53 = tpu.matmul %51, %52, %cst_24 {dimension_numbers = #tpu.dot_dimension_numbers<[1], [0], [0], [1], [0, 0, 1, 1], [], []>} : vector<16x64xbf16>, vector<64x32xbf16>, vector<16x32xf32> -> vector<16x32xf32>
    %c0_25 = arith.constant 0 : index
    %c0_26 = arith.constant 0 : index
    %54 = vector.load %arg5[%c0_25, %c0_26] : memref<1x32xf32, #tpu.memory_space<vmem>>, vector<1x32xf32>
    %55 = vector.broadcast %54 : vector<1x32xf32> to vector<16x32xf32>
    %56 = arith.addf %53, %55 : vector<16x32xf32>
    %57 = arith.addf %0, %56 : vector<16x32xf32>
    %cst_27 = arith.constant dense<0.000000e+00> : vector<16xf32>
    %58 = vector.multi_reduction <add>, %57, %cst_27 [1] : vector<16x32xf32> to vector<16xf32>
    %59 = vector.shape_cast %58 : vector<16xf32> to vector<16x1xf32>
    %cst_28 = arith.constant 3.200000e+01 : f32
    %60 = vector.broadcast %cst_28 : f32 to vector<16x1xf32>
    %61 = arith.divf %59, %60 : vector<16x1xf32>
    %62 = vector.broadcast %61 : vector<16x1xf32> to vector<16x32xf32>
    %63 = arith.subf %57, %62 : vector<16x32xf32>
    %64 = arith.mulf %63, %63 : vector<16x32xf32>
    %cst_29 = arith.constant dense<0.000000e+00> : vector<16xf32>
    %65 = vector.multi_reduction <add>, %64, %cst_29 [1] : vector<16x32xf32> to vector<16xf32>
    %66 = vector.shape_cast %65 : vector<16xf32> to vector<16x1xf32>
    %cst_30 = arith.constant 3.200000e+01 : f32
    %67 = vector.broadcast %cst_30 : f32 to vector<16x1xf32>
    %68 = arith.divf %66, %67 : vector<16x1xf32>
    %69 = vector.broadcast %61 : vector<16x1xf32> to vector<16x32xf32>
    %70 = arith.subf %57, %69 : vector<16x32xf32>
    %cst_31 = arith.constant 9.99999974E-6 : f32
    %71 = vector.broadcast %cst_31 : f32 to vector<16x1xf32>
    %72 = arith.addf %68, %71 : vector<16x1xf32>
    %73 = math.rsqrt %72 : vector<16x1xf32>
    %74 = vector.broadcast %73 : vector<16x1xf32> to vector<16x32xf32>
    %75 = arith.mulf %70, %74 : vector<16x32xf32>
    %c0_32 = arith.constant 0 : index
    %c0_33 = arith.constant 0 : index
    %76 = vector.load %arg6[%c0_32, %c0_33] : memref<1x32xf32, #tpu.memory_space<vmem>>, vector<1x32xf32>
    %77 = vector.broadcast %76 : vector<1x32xf32> to vector<16x32xf32>
    %78 = arith.mulf %75, %77 : vector<16x32xf32>
    %c0_34 = arith.constant 0 : index
    %c0_35 = arith.constant 0 : index
    %79 = vector.load %arg7[%c0_34, %c0_35] : memref<1x32xf32, #tpu.memory_space<vmem>>, vector<1x32xf32>
    %80 = vector.broadcast %79 : vector<1x32xf32> to vector<16x32xf32>
    %81 = arith.addf %78, %80 : vector<16x32xf32>
    %c0_36 = arith.constant 0 : index
    %c0_37 = arith.constant 0 : index
    %82 = vector.load %arg8[%c0_36, %c0_37] : memref<16x32xf32, #tpu.memory_space<vmem>>, vector<16x32xf32>
    tpu.vector_store %arg8[%c0_36, %c0_37], %81 {strides = array<i32>} : memref<16x32xf32, #tpu.memory_space<vmem>>, vector<16x32xf32>,
    return
  }
  func.func @transform_0(%arg0: i32) -> (i32, i32) {
    %c0_i32 = arith.constant 0 : i32
    %c0_i32_0 = arith.constant 0 : i32
    return %arg0, %c0_i32 : i32, i32
  }
  func.func @transform_1(%arg0: i32) -> (i32, i32) {
    %c0_i32 = arith.constant 0 : i32
    %c0_i32_0 = arith.constant 0 : i32
    %c0_i32_1 = arith.constant 0 : i32
    return %c0_i32, %c0_i32_0 : i32, i32
  }
  func.func @transform_2(%arg0: i32) -> (i32, i32) {
    %c0_i32 = arith.constant 0 : i32
    %c0_i32_0 = arith.constant 0 : i32
    %c0_i32_1 = arith.constant 0 : i32
    return %c0_i32, %c0_i32_0 : i32, i32
  }
  func.func @transform_3(%arg0: i32) -> (i32, i32) {
    %c0_i32 = arith.constant 0 : i32
    %c0_i32_0 = arith.constant 0 : i32
    %c0_i32_1 = arith.constant 0 : i32
    return %c0_i32, %c0_i32_0 : i32, i32
  }
  func.func @transform_4(%arg0: i32) -> (i32, i32) {
    %c0_i32 = arith.constant 0 : i32
    %c0_i32_0 = arith.constant 0 : i32
    %c0_i32_1 = arith.constant 0 : i32
    return %c0_i32, %c0_i32_0 : i32, i32
  }
  func.func @transform_5(%arg0: i32) -> (i32, i32) {
    %c0_i32 = arith.constant 0 : i32
    %c0_i32_0 = arith.constant 0 : i32
    %c0_i32_1 = arith.constant 0 : i32
    return %c0_i32, %c0_i32_0 : i32, i32
  }
  func.func @transform_6(%arg0: i32) -> (i32, i32) {
    %c0_i32 = arith.constant 0 : i32
    %c0_i32_0 = arith.constant 0 : i32
    %c0_i32_1 = arith.constant 0 : i32
    return %c0_i32, %c0_i32_0 : i32, i32
  }
  func.func @transform_7(%arg0: i32) -> (i32, i32) {
    %c0_i32 = arith.constant 0 : i32
    %c0_i32_0 = arith.constant 0 : i32
    return %arg0, %c0_i32 : i32, i32
  }
}

module attributes {stable_mosaic.version = 11 : i64} {
  func.func @_mlp_kernel(%arg0: i32, %arg1: memref<8x32xf32, #tpu.memory_space<vmem>>, %arg2: memref<32x64xbf16, #tpu.memory_space<vmem>>, %arg3: memref<1x64xf32, #tpu.memory_space<vmem>>, %arg4: memref<64x128xbf16, #tpu.memory_space<vmem>>, %arg5: memref<1x128xf32, #tpu.memory_space<vmem>>, %arg6: memref<8x128xf32, #tpu.memory_space<vmem>>) attributes {dimension_semantics = [#tpu.dimension_semantics<parallel>], iteration_bounds = array<i64: 1>, scalar_prefetch = 0 : i64, scratch_operands = 0 : i64, tpu.core_type = #tpu.core_type<tc>, window_params = [{transform_indices = @transform_0, window_bounds = array<i64: 8, 32>}, {pipeline_mode = #tpu.pipeline_mode<synchronous>, transform_indices = @transform_1, window_bounds = array<i64: 32, 64>}, {pipeline_mode = #tpu.pipeline_mode<synchronous>, transform_indices = @transform_2, window_bounds = array<i64: 1, 64>}, {pipeline_mode = #tpu.pipeline_mode<synchronous>, transform_indices = @transform_3, window_bounds = array<i64: 64, 128>}, {pipeline_mode = #tpu.pipeline_mode<synchronous>, transform_indices = @transform_4, window_bounds = array<i64: 1, 128>}, {transform_indices = @transform_5, window_bounds = array<i64: 8, 128>}]} {
    %c0 = arith.constant 0 : index
    %c0_0 = arith.constant 0 : index
    %0 = vector.load %arg1[%c0, %c0_0] : memref<8x32xf32, #tpu.memory_space<vmem>>, vector<8x32xf32>
    %1 = arith.truncf %0 : vector<8x32xf32> to vector<8x32xbf16>
    %c0_1 = arith.constant 0 : index
    %c0_2 = arith.constant 0 : index
    %2 = vector.load %arg2[%c0_1, %c0_2] : memref<32x64xbf16, #tpu.memory_space<vmem>>, vector<32x64xbf16>
    %cst = arith.constant dense<0.000000e+00> : vector<8x64xf32>
    %3 = tpu.matmul %1, %2, %cst {dimension_numbers = #tpu.dot_dimension_numbers<[1], [0], [0], [1], [0, 0, 1, 1], [], []>} : vector<8x32xbf16>, vector<32x64xbf16>, vector<8x64xf32> -> vector<8x64xf32>
    %c0_3 = arith.constant 0 : index
    %c0_4 = arith.constant 0 : index
    %4 = vector.load %arg3[%c0_3, %c0_4] : memref<1x64xf32, #tpu.memory_space<vmem>>, vector<1x64xf32>
    %5 = vector.broadcast %4 : vector<1x64xf32> to vector<8x64xf32>
    %6 = arith.addf %3, %5 : vector<8x64xf32>
    %cst_5 = arith.constant 5.000000e-01 : f32
    %7 = vector.broadcast %cst_5 : f32 to vector<8x64xf32>
    %8 = arith.mulf %7, %6 : vector<8x64xf32>
    %cst_6 = arith.constant 0.707106769 : f32
    %9 = vector.broadcast %cst_6 : f32 to vector<8x64xf32>
    %10 = arith.mulf %6, %9 : vector<8x64xf32>
    %cst_7 = arith.constant 0.000000e+00 : f32
    %11 = vector.broadcast %cst_7 : f32 to vector<8x64xf32>
    %12 = arith.cmpf oge, %10, %11 : vector<8x64xf32>
    %cst_8 = arith.constant 0.000000e+00 : f32
    %13 = vector.broadcast %cst_8 : f32 to vector<8x64xf32>
    %14 = arith.subf %13, %10 : vector<8x64xf32>
    %15 = arith.select %12, %10, %14 : vector<8x64xi1>, vector<8x64xf32>
    %cst_9 = arith.constant 0.327591091 : f32
    %16 = vector.broadcast %cst_9 : f32 to vector<8x64xf32>
    %17 = arith.mulf %16, %15 : vector<8x64xf32>
    %cst_10 = arith.constant 1.000000e+00 : f32
    %18 = vector.broadcast %cst_10 : f32 to vector<8x64xf32>
    %19 = arith.addf %18, %17 : vector<8x64xf32>
    %cst_11 = arith.constant 1.000000e+00 : f32
    %20 = vector.broadcast %cst_11 : f32 to vector<8x64xf32>
    %21 = arith.divf %20, %19 : vector<8x64xf32>
    %cst_12 = arith.constant 1.06140542 : f32
    %22 = vector.broadcast %cst_12 : f32 to vector<8x64xf32>
    %23 = arith.mulf %21, %22 : vector<8x64xf32>
    %cst_13 = arith.constant -1.45315206 : f32
    %24 = vector.broadcast %cst_13 : f32 to vector<8x64xf32>
    %25 = arith.addf %24, %23 : vector<8x64xf32>
    %26 = arith.mulf %21, %25 : vector<8x64xf32>
    %cst_14 = arith.constant 1.42141378 : f32
    %27 = vector.broadcast %cst_14 : f32 to vector<8x64xf32>
    %28 = arith.addf %27, %26 : vector<8x64xf32>
    %29 = arith.mulf %21, %28 : vector<8x64xf32>
    %cst_15 = arith.constant -0.284496725 : f32
    %30 = vector.broadcast %cst_15 : f32 to vector<8x64xf32>
    %31 = arith.addf %30, %29 : vector<8x64xf32>
    %32 = arith.mulf %21, %31 : vector<8x64xf32>
    %cst_16 = arith.constant 0.254829586 : f32
    %33 = vector.broadcast %cst_16 : f32 to vector<8x64xf32>
    %34 = arith.addf %33, %32 : vector<8x64xf32>
    %35 = arith.mulf %21, %34 : vector<8x64xf32>
    %cst_17 = arith.constant 0.000000e+00 : f32
    %36 = vector.broadcast %cst_17 : f32 to vector<8x64xf32>
    %37 = arith.subf %36, %15 : vector<8x64xf32>
    %38 = arith.mulf %37, %15 : vector<8x64xf32>
    %39 = math.exp %38 : vector<8x64xf32>
    %40 = arith.mulf %35, %39 : vector<8x64xf32>
    %cst_18 = arith.constant 1.000000e+00 : f32
    %41 = vector.broadcast %cst_18 : f32 to vector<8x64xf32>
    %42 = arith.subf %41, %40 : vector<8x64xf32>
    %cst_19 = arith.constant 0.000000e+00 : f32
    %43 = vector.broadcast %cst_19 : f32 to vector<8x64xf32>
    %44 = arith.cmpf oge, %10, %43 : vector<8x64xf32>
    %cst_20 = arith.constant 0.000000e+00 : f32
    %45 = vector.broadcast %cst_20 : f32 to vector<8x64xf32>
    %46 = arith.subf %45, %42 : vector<8x64xf32>
    %47 = arith.select %44, %42, %46 : vector<8x64xi1>, vector<8x64xf32>
    %cst_21 = arith.constant 1.000000e+00 : f32
    %48 = vector.broadcast %cst_21 : f32 to vector<8x64xf32>
    %49 = arith.addf %48, %47 : vector<8x64xf32>
    %50 = arith.mulf %8, %49 : vector<8x64xf32>
    %51 = arith.truncf %50 : vector<8x64xf32> to vector<8x64xbf16>
    %c0_22 = arith.constant 0 : index
    %c0_23 = arith.constant 0 : index
    %52 = vector.load %arg4[%c0_22, %c0_23] : memref<64x128xbf16, #tpu.memory_space<vmem>>, vector<64x128xbf16>
    %cst_24 = arith.constant dense<0.000000e+00> : vector<8x128xf32>
    %53 = tpu.matmul %51, %52, %cst_24 {dimension_numbers = #tpu.dot_dimension_numbers<[1], [0], [0], [1], [0, 0, 1, 1], [], []>} : vector<8x64xbf16>, vector<64x128xbf16>, vector<8x128xf32> -> vector<8x128xf32>
    %c0_25 = arith.constant 0 : index
    %c0_26 = arith.constant 0 : index
    %54 = vector.load %arg5[%c0_25, %c0_26] : memref<1x128xf32, #tpu.memory_space<vmem>>, vector<1x128xf32>
    %55 = vector.broadcast %54 : vector<1x128xf32> to vector<8x128xf32>
    %56 = arith.addf %53, %55 : vector<8x128xf32>
    %c0_27 = arith.constant 0 : index
    %c0_28 = arith.constant 0 : index
    %57 = vector.load %arg6[%c0_27, %c0_28] : memref<8x128xf32, #tpu.memory_space<vmem>>, vector<8x128xf32>
    tpu.vector_store %arg6[%c0_27, %c0_28], %56 {strides = array<i32>} : memref<8x128xf32, #tpu.memory_space<vmem>>, vector<8x128xf32>,
    return
  }
  func.func @transform_0(%arg0: i32) -> (i32, i32) {
    %c0_i32 = arith.constant 0 : i32
    %c0_i32_0 = arith.constant 0 : i32
    return %arg0, %c0_i32 : i32, i32
  }
  func.func @transform_1(%arg0: i32) -> (i32, i32) {
    %c0_i32 = arith.constant 0 : i32
    %c0_i32_0 = arith.constant 0 : i32
    %c0_i32_1 = arith.constant 0 : i32
    return %c0_i32, %c0_i32_0 : i32, i32
  }
  func.func @transform_2(%arg0: i32) -> (i32, i32) {
    %c0_i32 = arith.constant 0 : i32
    %c0_i32_0 = arith.constant 0 : i32
    %c0_i32_1 = arith.constant 0 : i32
    return %c0_i32, %c0_i32_0 : i32, i32
  }
  func.func @transform_3(%arg0: i32) -> (i32, i32) {
    %c0_i32 = arith.constant 0 : i32
    %c0_i32_0 = arith.constant 0 : i32
    %c0_i32_1 = arith.constant 0 : i32
    return %c0_i32, %c0_i32_0 : i32, i32
  }
  func.func @transform_4(%arg0: i32) -> (i32, i32) {
    %c0_i32 = arith.constant 0 : i32
    %c0_i32_0 = arith.constant 0 : i32
    %c0_i32_1 = arith.constant 0 : i32
    return %c0_i32, %c0_i32_0 : i32, i32
  }
  func.func @transform_5(%arg0: i32) -> (i32, i32) {
    %c0_i32 = arith.constant 0 : i32
    %c0_i32_0 = arith.constant 0 : i32
    return %arg0, %c0_i32 : i32, i32
  }
}

</mosaic_0001>

<bundles_post_ra>
// kernel: transformer_model_forward.10
= control target key start
LH: loop header
LB: loop body
LE: loop exit
PB: predicated region body
PF: predicated region fallthrough
CT: control target
= control target key end

     0   :  { %vm31_vm0 = vcmask 1041408   ;;  %v112_v0 = vmov 0.0   ;;  %vm113_vm1 = vmmov 0   ;;  %vm27_vm2 = vcmask 31744   ;;  %s152_s1 = inlined_call_operand.vmem [shape: bf16[4,128], index: 1, kind: input, shape index: {}]   ;;  %s153_s0 = inlined_call_operand.vmem [shape: f32[16,4], index: 0, kind: input, shape index: {}]   ;;  %s154_s2 = inlined_call_operand.vmem [shape: f32[1,128], index: 2, kind: input, shape index: {}]   ;;  %s155_s3 = inlined_call_operand.vmem [shape: f32[16,128], index: 3, kind: output, shape index: {}]  }
   0x1   :  { %104 = vmatprep.subr.bf16.mxu0 %v112_v0  ;;  %v26_v1 = vld [vmem:[%s152_s1] sm:$0x3]  ;;  %106 = vmatprep.mubr.msk.bf16.mxu0 %vm113_vm1, %v112_v0  ;;  %v24_v3 = vld [vmem:[%s153_s0 + $0x8] sm:$0xff] }
   0x2   :  { %v23_v2 = vld [vmem:[%s153_s0] sm:$0xff]  ;;  %v33_v4 = vsel %vm31_vm0, %v26_v1, 0 }
   0x3   :  { %v25_v5 = vpack.c.bf16 %v24_v3, %v23_v2  ;;  %105 = vmatpush3.bf16.msra.mxu0 %v33_v4  ;;  %v101_v6 = vld [vmem:[%s154_s2] ss:$0 sm:$0xff] }
   0x6   :  { %107 = vmatmul.mubr.msk.bf16.vlgmr.msra.gmra.mxu0 %vm27_vm2, %v25_v5 }
  0xc6   :  { %v69_v7 = vpop.f32.mrf.mxu0 }
  0xc7   :  { %v92_v8 = vadd.f32 %v101_v6, %v69_v7 }
  0xc8   :  { %v108_v9 = vpop.f32.mrf.mxu0 }
  0xc9   :  { %94 = vst [vmem:[%s155_s3] sm:$0xff] %v92_v8 }
  0xca   :  { %v72_v10 = vpop.f32.mrf.mxu0 }
  0xcb   :  { %v93_v11 = vadd.f32 %v101_v6, %v72_v10 }
  0xcc   :  { %v109_v12 = vpop.f32.mrf.mxu0 }
  0xcd   :  { %95 = vst [vmem:[%s155_s3 + $0x8] sm:$0xff] %v93_v11 }

// kernel: transformer_model_forward.11
= control target key start
LH: loop header
LB: loop body
LE: loop exit
PB: predicated region body
PF: predicated region fallthrough
CT: control target
= control target key end

     0   :  { %v147_v0 = vmov 0.0   ;;  %vm148_vm0 = vmmov 0   ;;  %vm42_vm1 = vcmask 261120   ;;  %s187_s1 = inlined_call_operand.vmem [shape: bf16[32,128], index: 1, kind: input, shape index: {}]   ;;  %s188_s0 = inlined_call_operand.vmem [shape: f32[16,32], index: 0, kind: input, shape index: {}]   ;;  %s189_s2 = inlined_call_operand.vmem [shape: f32[1,128], index: 2, kind: input, shape index: {}]   ;;  %s190_s3 = inlined_call_operand.vmem [shape: bf16[16,128], index: 3, kind: output, shape index: {}]  }
   0x1   :  { %135 = vmatprep.subr.bf16.mxu0 %v147_v0  ;;  %v145_v1 = vld [vmem:[%s187_s1 + $0x8] sm:$0xff]   ;;  %139 = vmatprep.mubr.msk.bf16.mxu0 %vm148_vm0, %v147_v0  ;;  %v146_v2 = vld [vmem:[%s187_s1] sm:$0xff]  }
   0x2   :  { %136 = vmatpush3.bf16.msra.mxu0 %v145_v1  ;;  %v23_v3 = vld [vmem:[%s188_s0] sm:$0xff]  ;;  %v24_v4 = vld [vmem:[%s188_s0 + $0x8] sm:$0xff] }
   0x3   :  { %137 = vmatprep.subr.bf16.mxu0 %v147_v0  ;;  %v25_v5 = vpack.c.bf16 %v24_v4, %v23_v3  ;;  %v122_v7 = vld [vmem:[%s189_s2] ss:$0 sm:$0xff] }
   0x6   :  { %138 = vmatpush3.bf16.msra.mxu0 %v146_v2 }
   0x9   :  { %140 = vmatmul.mubr.msk.bf16.vlgmr.msra.gmra.mxu0 %vm42_vm1, %v25_v5 }
  0xc9   :  { %v80_v6 = vpop.f32.mrf.mxu0 }
  0xca   :  { %v103_v10 = vadd.f32 %v122_v7, %v80_v6 }
  0xcb   :  { %v141_v8 = vpop.f32.mrf.mxu0 }
  0xcd   :  { %v83_v9 = vpop.f32.mrf.mxu0 }
  0xce   :  { %v104_v11 = vadd.f32 %v122_v7, %v83_v9 }
  0xcf   :  { %v142_v12 = vpop.f32.mrf.mxu0 }
  0xd0   :  { %v130_v13 = vpack.c.bf16 %v104_v11, %v103_v10 }
  0xd2   :  { %131 = vst [vmem:[%s190_s3] sm:$0xff] %v130_v13  }

// kernel: transformer_model_forward.13
= control target key start
LH: loop header
LB: loop body
LE: loop exit
PB: predicated region body
PF: predicated region fallthrough
CT: control target
= control target key end

     0   :  { %v181_v0 = vmov 0.0   ;;  %vm182_vm0 = vmmov 0   ;;  %vm54_vm1 = vcmask 261120   ;;  %s255_s2 = inlined_call_operand.vmem [shape: bf16[32,32], index: 2, kind: input, shape index: {}]   ;;  %s256_s0 = inlined_call_operand.vmem [shape: bf16[16,32], index: 0, kind: input, shape index: {}]   ;;  %s257_s3 = inlined_call_operand.vmem [shape: f32[1,32], index: 3, kind: input, shape index: {}]   ;;  %s258_s1 = inlined_call_operand.vmem [shape: f32[16,32], index: 1, kind: input, shape index: {}]   ;;  %s259_s4 = inlined_call_operand.vmem [shape: f32[1,32], index: 4, kind: input, shape index: {}]   ;;  %s260_s5 = inlined_call_operand.vmem [shape: f32[1,32], index: 5, kind: input, shape index: {}]   ;;  %s261_s6 = inlined_call_operand.vmem [shape: f32[16,32], index: 6, kind: output, shape index: {}]  }
   0x1   :  { %164 = vmatprep.subr.bf16.mxu0 %v181_v0  ;;  %v174_v1 = vld [vmem:[%s255_s2 + $0x8] sm:$0xff]   ;;  %168 = vmatprep.mubr.msk.bf16.mxu0 %vm182_vm0, %v181_v0  ;;  %v175_v2 = vld [vmem:[%s255_s2] sm:$0xff]  }
   0x2   :  { %165 = vmatpush3.bf16.msra.mxu0 %v174_v1  ;;  %v176_v3 = vld [vmem:[%s256_s0] sm:$0xff]   ;;  %v100_v11 = vld [vmem:[%s258_s1 + $0x8] sm:$0xff] }
   0x3   :  { %166 = vmatprep.subr.bf16.mxu0 %v181_v0  ;;  %v154_v4 = vld [vmem:[%s257_s3] ss:$0 sm:$0xff] }
   0x4   :  { %v99_v6 = vld [vmem:[%s258_s1] sm:$0xff] }
   0x5   :  { %v159_v34 = vld [vmem:[%s259_s4] ss:$0 sm:$0xff] }
   0x6   :  { %167 = vmatpush3.bf16.msra.mxu0 %v175_v2  ;;  %v160_v36 = vld [vmem:[%s260_s5] ss:$0 sm:$0xff] }
   0x9   :  { %169 = vmatmul.mubr.msk.bf16.vlgmr.msra.gmra.mxu0 %vm54_vm1, %v176_v3 }
  0xc9   :  { %v92_v5 = vpop.f32.mrf.mxu0 }
  0xca   :  { %v93_v7 = vadd.f32 %v154_v4, %v92_v5 }
  0xcb   :  { %v170_v8 = vpop.f32.mrf.mxu0 }
  0xcc   :  { %v101_v9 = vadd.f32 %v99_v6, %v93_v7 }
  0xcd   :  { %v95_v10 = vpop.f32.mrf.mxu0 }
  0xce   :  { %v96_v12 = vadd.f32 %v154_v4, %v95_v10  ;;  %v103_v13 = vsel %vm54_vm1, %v101_v9, 0.0 }
  0xcf   :  { %104 = vadd.xlane.f32.xlu0 %v103_v13  ;;  %v171_v14 = vpop.f32.mrf.mxu0 }
  0xd0   :  { %v102_v15 = vadd.f32 %v100_v11, %v96_v12 }
  0xd2   :  { %v106_v16 = vsel %vm54_vm1, %v102_v15, 0.0 }
  0xd3   :  { %107 = vadd.xlane.f32.xlu0 %v106_v16 }
 0x158   :  { %v105_v17 = vpop.xlane.xlu0 %104 }
 0x159   :  { %v110_v18 = vmul.f32 0.03125, %v105_v17 }
 0x15b   :  { %v112_v19 = vsub.f32 %v101_v9, %v110_v18 }
 0x15c   :  { %v108_v20 = vpop.xlane.xlu0 %107 }
 0x15d   :  { %v111_v21 = vmul.f32 0.03125, %v108_v20  ;;  %v114_v22 = vmul.f32 %v112_v19, %v112_v19 }
 0x15f   :  { %v113_v23 = vsub.f32 %v102_v15, %v111_v21  ;;  %v116_v24 = vsel %vm54_vm1, %v114_v22, 0.0 }
 0x160   :  { %117 = vadd.xlane.f32.xlu1 %v116_v24 }
 0x161   :  { %v115_v25 = vmul.f32 %v113_v23, %v113_v23 }
 0x163   :  { %v119_v26 = vsel %vm54_vm1, %v115_v25, 0.0 }
 0x164   :  { %120 = vadd.xlane.f32.xlu1 %v119_v26 }
 0x1e9   :  { %v118_v27 = vpop.xlane.xlu1 %117 }
 0x1ea   :  { %v122_v28 = vmul.f32 0.03125, %v118_v27 }
 0x1ec   :  { %v124_v29 = vadd.f32 1e-05, %v122_v28 }
 0x1ed   :  { %v121_v30 = vpop.xlane.xlu1 %120 }
 0x1ee   :  { %177 = vrsqrt.f32 %v124_v29  ;;  %v123_v31 = vmul.f32 0.03125, %v121_v30 }
 0x1f0   :  { %v125_v32 = vadd.f32 1e-05, %v123_v31 }
 0x1f2   :  { %179 = vrsqrt.f32 %v125_v32 }
 0x1fb   :  { %v178_v33 = vpop.eup %177 }
 0x1fc   :  { %v128_v35 = vmul.f32 %v178_v33, %v112_v19 }
 0x1fe   :  { %v137_v37 = vmul.f32 %v159_v34, %v128_v35 }
 0x1ff   :  { %v180_v38 = vpop.eup %179 }
 0x200   :  { %v146_v39 = vadd.f32 %v160_v36, %v137_v37  ;;  %v129_v40 = vmul.f32 %v180_v38, %v113_v23 }
 0x202   :  { %148 = vst.msk [vmem:[%s261_s6] sm:$0xff] %vm54_vm1, %v146_v39  ;;  %v138_v41 = vmul.f32 %v159_v34, %v129_v40 }
 0x204   :  { %v147_v42 = vadd.f32 %v160_v36, %v138_v41 }
 0x206   :  { %149 = vst.msk [vmem:[%s261_s6 + $0x8] sm:$0xff] %vm54_vm1, %v147_v42 }

// kernel: transformer_model_forward.12
= control target key start
LH: loop header
LB: loop body
LE: loop exit
PB: predicated region body
PF: predicated region fallthrough
CT: control target
= control target key end

     0   :  { %s1839_s12 = smov 0   ;;  %s1841_s13 = smov 0   ;;  %s2242_s0 = inlined_call_operand.vmem [shape: bf16[8,2,3,2,16], index: 0, kind: input, shape index: {}, may-alias: {0,1,2}]   ;;  %s2243_s1 = inlined_call_operand.vmem [shape: bf16[8,2,3,2,16], index: 1, kind: input, shape index: {}, may-alias: {0,1,2}]   ;;  %s2244_s2 = inlined_call_operand.vmem [shape: bf16[8,2,3,2,16], index: 2, kind: input, shape index: {}, may-alias: {0,1,2}]   ;;  %s2245_s3 = inlined_call_operand.vmem [shape: bf16[8,2,2,16], index: 3, kind: output, shape index: {}]  }
   0x1   :  { %s1843_s14 = smov 0   ;;  %s1845_s15 = smov 0  }
   0x2   :  { %s1847_s16 = smov 0  }
   0x3 LB: > { %s32_s17 = sadd.s32 1, %s1808_s15  ;;  %s1623_s18 = sadd.s32 4294967295, %s1812_s16   ;;  %s1812_s16 = sphi %s1847_s16, %s13_s16   ;;  %s1808_s15 = sphi %s1845_s15, %s2255_s15   ;;  %s1804_s14 = sphi %s1843_s14, %s2254_s14   ;;  %s1800_s13 = sphi %s1841_s13, %s2253_s13   ;;  %s1796_s12 = sphi %s1839_s12, %s2252_s12  }
   0x4   : > { %p34_p0 = scmp.ge.s32.totalorder %s32_s17, 2  ;;  %p48_p1 = scmp.ne.s32.totalorder %s1800_s13, %s1796_s12 }
   0x5   : > { %p49_p2 = scmp.eq.s32.totalorder %s1812_s16, 0  ;;  %p136_p4 = scmp.eq.s32.totalorder %s1623_s18, 1 }
   0x6   : > { %s2257_s17 = smov (%p34_p0, %s32_s17), 0  ;;  %s41_s21 = sadd.s32 1, %s1800_s13 }
   0x7   : > { %p1871_p3 = por %p49_p2, %p48_p1  ;;  %s37_s20 = ssub.s32 %s1808_s15, %s2257_s17 }
   0x8   : > { %p39_p5 = scmp.eq.s32.totalorder %s37_s20, 0  ;;  %p1878_p6 = por %p136_p4, %p48_p1 }
   0x9   : > { %p1626_p7 = scmp.ge.s32.totalorder %s1812_s16, 2 }
   0xa   : > { %s1883_s23 = scalar_select %p39_p5, %s1800_s13, %s41_s21  }
   0xb   : > { %158 = sbr.rel (%p1626_p7) target bundleno = 46 (0x2e), region = 16 }
  0x10   : > { %161 = sbr.rel (!%p1871_p3) target bundleno = 26 (0x1a), region = 20  ;;  %s163_s24 = sand.u32 (%p1871_p3), 1, %s1800_s13  }
  0x11   : > { %s1714_s25 = smul.u32 (%p1871_p3), 3, %s1808_s15  ;;  %s1627_s26 = sshll.u32 (%p1871_p3), %s163_s24, 3 }
  0x12   : > { %s165_s30 = scalar_lea.vmem (%p1871_p3), [#allocation5], %s1627_s26 }
  0x13   : > { %s170_s29 = scalar_lea.vmem (%p1871_p3), %s2242_s0, %s1714_s25 }
  0x14   : > { %v187_v0 = vld [vmem:[%s170_s29] sm:$0x1] (%p1871_p3)  ;;  %v189_v1 = vld [vmem:[%s170_s29 + $0x6] sm:$0x1] (%p1871_p3)  ;;  %v191_v2 = vld [vmem:[%s170_s29 + $0xc] sm:$0x1] (%p1871_p3) }
  0x15   : > { %188 = vst [vmem:[%s165_s30] sm:$0x1] %v187_v0  ;;  %190 = vst [vmem:[%s165_s30 + $0x1] sm:$0x1] %v189_v1  ;;  %v193_v3 = vld [vmem:[%s170_s29 + $0x12] sm:$0x1] }
  0x16   : > { %192 = vst [vmem:[%s165_s30 + $0x2] sm:$0x1] %v191_v2  ;;  %v195_v4 = vld [vmem:[%s170_s29 + $0x18] sm:$0x1]  ;;  %v197_v5 = vld [vmem:[%s170_s29 + $0x1e] sm:$0x1] }
  0x17   : > { %194 = vst [vmem:[%s165_s30 + $0x3] sm:$0x1] %v193_v3  ;;  %196 = vst [vmem:[%s165_s30 + $0x4] sm:$0x1] %v195_v4  ;;  %v199_v6 = vld [vmem:[%s170_s29 + $0x24] sm:$0x1] }
  0x18   : > { %198 = vst [vmem:[%s165_s30 + $0x5] sm:$0x1] %v197_v5  ;;  %v201_v7 = vld [vmem:[%s170_s29 + $0x2a] sm:$0x1]  ;;  %200 = vst [vmem:[%s165_s30 + $0x6] sm:$0x1] %v199_v6 }
  0x19   : > { %202 = vst [vmem:[%s165_s30 + $0x7] sm:$0x1] %v201_v7 }
  0x1a PF: > { %242 = sbr.rel (!%p1871_p3) target bundleno = 36 (0x24), region = 61  ;;  %s244_s4 = sand.u32 (%p1871_p3), 1, %s1800_s13  }
  0x1b   : > { %s1530_s5 = smul.u32 (%p1871_p3), 3, %s1808_s15  ;;  %s1628_s6 = sshll.u32 (%p1871_p3), %s244_s4, 3 }
  0x1c   : > { %s246_s10 = scalar_lea.vmem (%p1871_p3), [#allocation6], %s1628_s6 }
  0x1d   : > { %s1533_s9 = scalar_lea.vmem (%p1871_p3), %s2243_s1, %s1530_s5 }
  0x1e   : > { %v1629_v8 = vld [vmem:[%s1533_s9 + $0x1] sm:$0x1] (%p1871_p3)  ;;  %v1630_v9 = vld [vmem:[%s1533_s9 + $0x7] sm:$0x1] (%p1871_p3)  ;;  %v1631_v10 = vld [vmem:[%s1533_s9 + $0xd] sm:$0x1] (%p1871_p3) }
  0x1f   : > { %270 = vst [vmem:[%s246_s10] sm:$0x1] %v1629_v8  ;;  %272 = vst [vmem:[%s246_s10 + $0x1] sm:$0x1] %v1630_v9  ;;  %v1632_v11 = vld [vmem:[%s1533_s9 + $0x13] sm:$0x1] }
  0x20   : > { %274 = vst [vmem:[%s246_s10 + $0x2] sm:$0x1] %v1631_v10  ;;  %v1633_v12 = vld [vmem:[%s1533_s9 + $0x19] sm:$0x1]  ;;  %v1634_v13 = vld [vmem:[%s1533_s9 + $0x1f] sm:$0x1] }
  0x21   : > { %276 = vst [vmem:[%s246_s10 + $0x3] sm:$0x1] %v1632_v11  ;;  %278 = vst [vmem:[%s246_s10 + $0x4] sm:$0x1] %v1633_v12  ;;  %v1635_v14 = vld [vmem:[%s1533_s9 + $0x25] sm:$0x1] }
  0x22   : > { %280 = vst [vmem:[%s246_s10 + $0x5] sm:$0x1] %v1634_v13  ;;  %v1636_v15 = vld [vmem:[%s1533_s9 + $0x2b] sm:$0x1]  ;;  %282 = vst [vmem:[%s246_s10 + $0x6] sm:$0x1] %v1635_v14 }
  0x23   : > { %284 = vst [vmem:[%s246_s10 + $0x7] sm:$0x1] %v1636_v15 }
  0x24 PF: > { %324 = sbr.rel (!%p1871_p3) target bundleno = 46 (0x2e), region = 102  ;;  %s326_s11 = sand.u32 (%p1871_p3), 1, %s1800_s13  }
  0x25   : > { %s1537_s18 = smul.u32 (%p1871_p3), 3, %s1808_s15  ;;  %s1637_s20 = sshll.u32 (%p1871_p3), %s326_s11, 3 }
  0x26   : > { %s328_s26 = scalar_lea.vmem (%p1871_p3), [#allocation7], %s1637_s20 }
  0x27   : > { %s1540_s25 = scalar_lea.vmem (%p1871_p3), %s2244_s2, %s1537_s18 }
  0x28   : > { %v1638_v16 = vld [vmem:[%s1540_s25 + $0x2] sm:$0x1] (%p1871_p3)  ;;  %v1639_v17 = vld [vmem:[%s1540_s25 + $0x8] sm:$0x1] (%p1871_p3)  ;;  %v1640_v18 = vld [vmem:[%s1540_s25 + $0xe] sm:$0x1] (%p1871_p3) }
  0x29   : > { %352 = vst [vmem:[%s328_s26] sm:$0x1] %v1638_v16  ;;  %354 = vst [vmem:[%s328_s26 + $0x1] sm:$0x1] %v1639_v17  ;;  %v1641_v19 = vld [vmem:[%s1540_s25 + $0x14] sm:$0x1] }
  0x2a   : > { %356 = vst [vmem:[%s328_s26 + $0x2] sm:$0x1] %v1640_v18  ;;  %v1642_v20 = vld [vmem:[%s1540_s25 + $0x1a] sm:$0x1]  ;;  %v1643_v21 = vld [vmem:[%s1540_s25 + $0x20] sm:$0x1] }
  0x2b   : > { %358 = vst [vmem:[%s328_s26 + $0x3] sm:$0x1] %v1641_v19  ;;  %360 = vst [vmem:[%s328_s26 + $0x4] sm:$0x1] %v1642_v20  ;;  %v1644_v22 = vld [vmem:[%s1540_s25 + $0x26] sm:$0x1] }
  0x2c   : > { %362 = vst [vmem:[%s328_s26 + $0x5] sm:$0x1] %v1643_v21  ;;  %v1645_v23 = vld [vmem:[%s1540_s25 + $0x2c] sm:$0x1]  ;;  %364 = vst [vmem:[%s328_s26 + $0x6] sm:$0x1] %v1644_v22 }
  0x2d   : > { %366 = vst [vmem:[%s328_s26 + $0x7] sm:$0x1] %v1645_v23 }
  0x2e PF: > { %p1646_p8 = scmp.ge.s32.totalorder %s1812_s16, 1  ;;  %p405_p9 = scmp.lt.s32.totalorder %s1812_s16, 3 }
  0x30   : > { %p406_p10 = pnand %p1646_p8, %p405_p9 }
  0x31   : > { %s412_s19 = sand.u32 (!%p406_p10), 1, %s1796_s12  }
  0x32   : > { %409 = sbr.rel (%p406_p10) target bundleno = 1366 (0x556), region = 143  ;;  %s1911_s27 = sshll.u32 (!%p406_p10), %s412_s19, 3 }
  0x33   : > { %s1920_s12 = scalar_lea.vmem (!%p406_p10), [#allocation6], %s1911_s27  ;;  %s414_s28 = scalar_lea.vmem (!%p406_p10), [#allocation5], %s1911_s27 }
  0x34   : > { %s428_s29 = scalar_lea.vmem (!%p406_p10), [#allocation7], %s1911_s27  ;;  %s2137_s30 = scalar_lea.vmem (!%p406_p10), [#allocation8], %s1911_s27 }
  0x37   : > { %vm471_vm0 = vcmask 130048   ;;  %v499_v24 = vlaneseq  ;;  %v1814_v25 = vmov 0.0   ;;  %v1815_v26 = vmov 1966171168   ;;  %v474_v42 = vld [vmem:[%s414_s28] sm:$0x1]  ;;  %s1440_s6 = scalar_lea.vmem (%p1878_p6), %s2245_s3, %s1804_s14 }
  0x38   : > { %1690 = vmatprep.subr.bf16.mxu0 %v1814_v25  ;;  %473 = vst.msk [vmem:[#allocation4 + $0x8] sm:$0xff] %vm471_vm0, %v1814_v25  ;;  %v521_v27 = vunpack.c.l.s4 %v1815_v26  ;;  %472 = vst.msk [vmem:[#allocation4] sm:$0xff] %vm471_vm0, %v1814_v25  ;;  %1696 = vmatprep.subr.bf16.mxu1 %v1814_v25  ;;  %v1651_v29 = vld.sshfl [vmem:[%s1920_s12] sm:$0x1 pattern:$0x75316420] }
  0x39   : > { %v524_v28 = vshrl.u32 %v499_v24, 7  ;;  %vm641_vm1 = vcmask 1041409   ;;  %v1652_v31 = vld.sshfl [vmem:[%s1920_s12 + $0x1] sm:$0x1 pattern:$0x75316420] }
  0x3a   : > { %v522_v30 = vunpack.c.0.s8 %v521_v27  ;;  %vm644_vm2 = vcmask 1042434   ;;  %v1653_v32 = vld.sshfl [vmem:[%s1920_s12 + $0x2] sm:$0x1 pattern:$0x75316420]  ;;  %vm647_vm3 = vcmask 1043459  }
  0x3b   : > { %vm1816_vm4 = vmmov 0   ;;  %v1654_v34 = vld.sshfl [vmem:[%s1920_s12 + $0x3] sm:$0x1 pattern:$0x75316420]  ;;  %vm650_vm5 = vcmask 1044484  }
  0x3c   : > { %v1925_v33 = vsub.s32 %v522_v30, %v524_v28  ;;  %1692 = vmatprep.mubr.msk.bf16.mxu0 %vm1816_vm4, %v1814_v25  ;;  %1698 = vmatprep.mubr.msk.bf16.mxu1 %vm1816_vm4, %v1814_v25  ;;  %vm653_vm6 = vcmask 1045509   ;;  %v1655_v35 = vld.sshfl [vmem:[%s1920_s12 + $0x4] sm:$0x1 pattern:$0x75316420]  ;;  %vm656_vm7 = vcmask 1046534  }
  0x3d   : > { %v1656_v40 = vld.sshfl [vmem:[%s1920_s12 + $0x5] sm:$0x1 pattern:$0x75316420]  ;;  %vm659_vm8 = vcmask 1047559   ;;  %vm466_vm9 = vcmask 7168  }
  0x3e   : > { %v683_v36 = vrot.slane %v1651_v29, %v1925_v33  ;;  %v697_v37 = vrot.slane %v1652_v31, %v1925_v33  ;;  %v711_v38 = vrot.slane %v1653_v32, %v1925_v33  ;;  %v725_v39 = vrot.slane %v1654_v34, %v1925_v33  ;;  %v1657_v43 = vld.sshfl [vmem:[%s1920_s12 + $0x6] sm:$0x1 pattern:$0x75316420]  ;;  %v475_v48 = vld [vmem:[%s414_s28 + $0x1] sm:$0x1] }
  0x3f   : > { %v739_v41 = vrot.slane %v1655_v35, %v1925_v33  ;;  %v753_v44 = vrot.slane %v1656_v40, %v1925_v33  ;;  %v1658_v49 = vld.sshfl [vmem:[%s1920_s12 + $0x7] sm:$0x1 pattern:$0x75316420]  ;;  %v767_v50 = vrot.slane %v1657_v43, %v1925_v33  ;;  %v476_v53 = vld [vmem:[%s414_s28 + $0x2] sm:$0x1] }
  0x40   : > { %v1942_v45 = vunpack.c.l.b16 %v683_v36  ;;  %v1944_v46 = vunpack.c.l.b16 %v697_v37  ;;  %v1946_v47 = vunpack.c.l.b16 %v711_v38  ;;  %v1950_v51 = vunpack.c.l.b16 %v725_v39  ;;  %v477_v58 = vld [vmem:[%s414_s28 + $0x3] sm:$0x1]  ;;  %v478_v59 = vld [vmem:[%s414_s28 + $0x4] sm:$0x1]  ;;  %v479_v63 = vld [vmem:[%s414_s28 + $0x5] sm:$0x1] }
  0x41   : > { %v1952_v52 = vunpack.c.l.b16 %v739_v41  ;;  %v781_v54 = vrot.slane %v1658_v49, %v1925_v33  ;;  %v1955_v55 = vunpack.c.l.b16 %v753_v44  ;;  %v1959_v60 = vunpack.c.l.b16 %v767_v50  ;;  %v480_v0 = vld [vmem:[%s414_s28 + $0x6] sm:$0x1]  ;;  %v481_v4 = vld [vmem:[%s414_s28 + $0x7] sm:$0x1]  ;;  %469 = vst.msk [vmem:[#allocation3] sm:$0xff] %vm466_vm9, %v1814_v25  ;;  %470 = vst.msk [vmem:[#allocation3 + $0x8] sm:$0xff] %vm466_vm9, %v1814_v25 }
  0x42   : > { %v790_v56 = vrot.slane %v1944_v46, 7  ;;  %v792_v57 = vrot.slane %v1946_v47, 6  ;;  %v794_v61 = vrot.slane %v1950_v51, 5  ;;  %v504_v5 = vmul.bf16 1048592000, %v474_v42 }
  0x43   : > { %v796_v62 = vrot.slane %v1952_v52, 4  ;;  %v1963_v1 = vunpack.c.l.b16 %v781_v54  ;;  %v798_v3 = vrot.slane %v1955_v55, 3  ;;  %v800_v7 = vrot.slane %v1959_v60, 2 }
  0x44   : > { %v791_v2 = vsel %vm641_vm1, %v790_v56, %v1942_v45  ;;  %v505_v8 = vmul.bf16 1048592000, %v475_v48  ;;  %v506_v9 = vmul.bf16 1048592000, %v476_v53  ;;  %v507_v12 = vmul.bf16 1048592000, %v477_v58 }
  0x45   : > { %v793_v6 = vsel %vm644_vm2, %v792_v57, %v791_v2  ;;  %v802_v11 = vrot.slane %v1963_v1, 1  ;;  %v508_v13 = vmul.bf16 1048592000, %v478_v59  ;;  %v509_v15 = vmul.bf16 1048592000, %v479_v63 }
  0x46   : > { %v795_v10 = vsel %vm647_vm3, %v794_v61, %v793_v6  ;;  %v510_v16 = vmul.bf16 1048592000, %v480_v0  ;;  %v511_v17 = vmul.bf16 1048592000, %v481_v4  ;;  %v526_v19 = vrot.slane %v504_v5, %v1925_v33 }
  0x47   : > { %v797_v14 = vsel %vm650_vm5, %v796_v62, %v795_v10  ;;  %v540_v20 = vrot.slane %v505_v8, %v1925_v33  ;;  %v554_v21 = vrot.slane %v506_v9, %v1925_v33  ;;  %v568_v23 = vrot.slane %v507_v12, %v1925_v33 }
  0x48   : > { %v799_v18 = vsel %vm653_vm6, %v798_v3, %v797_v14  ;;  %v582_v26 = vrot.slane %v508_v13, %v1925_v33  ;;  %v596_v27 = vrot.slane %v509_v15, %v1925_v33  ;;  %v533_v29 = vrot.slane %v526_v19, %v1925_v33 }
  0x49   : > { %v801_v22 = vsel %vm656_vm7, %v800_v7, %v799_v18  ;;  %v547_v30 = vrot.slane %v540_v20, %v1925_v33  ;;  %v561_v31 = vrot.slane %v554_v21, %v1925_v33  ;;  %v575_v34 = vrot.slane %v568_v23, %v1925_v33  ;;  %v1661_v18 = vld.sshfl [vmem:[%s428_s29 + $0x1] sm:$0x1 pattern:$0x75316420] }
  0x4a   : > { %v803_v28 = vsel %vm659_vm8, %v802_v11, %v801_v22  ;;  %v589_v35 = vrot.slane %v582_v26, %v1925_v33  ;;  %v603_v36 = vrot.slane %v596_v27, %v1925_v33  ;;  %v610_v37 = vrot.slane %v510_v16, %v1925_v33  ;;  %v1662_v20 = vld.sshfl [vmem:[%s428_s29 + $0x2] sm:$0x1 pattern:$0x75316420] }
  0x4b   : > { %v804_v32 = vpack.c.b16 %v803_v28, %v803_v28  ;;  %v624_v38 = vrot.slane %v511_v17, %v1925_v33  ;;  %v1990_v39 = vunpack.c.l.b16 %v533_v29  ;;  %v1992_v40 = vunpack.c.l.b16 %v547_v30  ;;  %v1660_v23 = vld.sshfl [vmem:[%s428_s29] sm:$0x1 pattern:$0x75316420] }
  0x4c   : > { %v1995_v42 = vunpack.c.l.b16 %v561_v31  ;;  %v1997_v43 = vunpack.c.l.b16 %v575_v34  ;;  %v1999_v44 = vunpack.c.l.b16 %v589_v35  ;;  %v617_v48 = vrot.slane %v610_v37, %v1925_v33  ;;  %v1663_v27 = vld.sshfl [vmem:[%s428_s29 + $0x3] sm:$0x1 pattern:$0x75316420] }
  0x4d   : > { %v810_v41 = vsel %vm471_vm0, %v804_v32, 0  ;;  %v631_v49 = vrot.slane %v624_v38, %v1925_v33  ;;  %v2003_v50 = vunpack.c.l.b16 %v603_v36  ;;  %v640_v53 = vrot.slane %v1992_v40, 7  ;;  %v1664_v31 = vld.sshfl [vmem:[%s428_s29 + $0x4] sm:$0x1 pattern:$0x75316420] }
  0x4e   : > { %1691 = vmatpush3.bf16.xpose.msra.mxu0 %v810_v41  ;;  %v643_v54 = vrot.slane %v1995_v42, 6  ;;  %v646_v56 = vrot.slane %v1997_v43, 5  ;;  %v649_v57 = vrot.slane %v1999_v44, 4  ;;  %v2010_v58 = vunpack.c.l.b16 %v617_v48 }
  0x4f   : > { %1708 = vmatprep.subr.bf16.mxu0 %v1814_v25  ;;  %v2012_v59 = vunpack.c.l.b16 %v631_v49  ;;  %v642_v61 = vsel %vm641_vm1, %v640_v53, %v1990_v39  ;;  %v652_v62 = vrot.slane %v2003_v50, 3  ;;  %v1817_v9 = vmov -1e+30  }
  0x50   : > { %v645_v63 = vsel %vm644_vm2, %v643_v54, %v642_v61  ;;  %v655_v2 = vrot.slane %v2010_v58, 2  ;;  %467 = vst.msk [vmem:[#allocation2] sm:$0xff] %vm466_vm9, %v1817_v9  ;;  %468 = vst.msk [vmem:[#allocation2 + $0x8] sm:$0xff] %vm466_vm9, %v1817_v9  ;;  %v2035_v10 = vand.u32 127, %v499_v24  ;;  %vm856_vm11 = vcmask 64512  }
  0x51   : > { %v648_v0 = vsel %vm647_vm3, %v646_v56, %v645_v63  ;;  %v658_v3 = vrot.slane %v2012_v59, 1  ;;  %v1818_v17 = vmov 0   ;;  %v923_v21 = vrot.slane %v1661_v18, %v1925_v33  ;;  %v1665_v35 = vld.sshfl [vmem:[%s428_s29 + $0x5] sm:$0x1 pattern:$0x75316420] }
  0x52   : > { %v651_v4 = vsel %vm650_vm5, %v649_v57, %v648_v0  ;;  %vm503_vm10 = vcmp.lt.s32.totalorder %v2035_v10, 4  ;;  %1760 = vset.pattern.permute.xlu0 %v1818_v17  ;;  %1761 = vset.pattern.permute.xlu1 %v1818_v17  ;;  %v937_v26 = vrot.slane %v1662_v20, %v1925_v33  ;;  %v909_v28 = vrot.slane %v1660_v23, %v1925_v33  ;;  %v1666_v41 = vld.sshfl [vmem:[%s428_s29 + $0x6] sm:$0x1 pattern:$0x75316420] }
  0x53   : > { %v654_v5 = vsel %vm653_vm6, %v652_v62, %v651_v4  ;;  %v1009_v29 = vunpack.c.l.b16 %v923_v21  ;;  %v951_v32 = vrot.slane %v1663_v27, %v1925_v33  ;;  %v965_v36 = vrot.slane %v1664_v31, %v1925_v33  ;;  %v1667_v53 = vld.sshfl [vmem:[%s428_s29 + $0x7] sm:$0x1 pattern:$0x75316420] }
  0x54   : > { %v657_v6 = vsel %vm656_vm7, %v655_v2, %v654_v5  ;;  %v1010_v34 = vunpack.c.l.b16 %v937_v26  ;;  %v1008_v37 = vunpack.c.l.b16 %v909_v28  ;;  %v979_v48 = vrot.slane %v1665_v35, %v1925_v33 }
  0x55   : > { %v660_v7 = vsel %vm659_vm8, %v658_v3, %v657_v6  ;;  %v1016_v38 = vrot.slane %v1009_v29, 7  ;;  %v1011_v49 = vunpack.c.l.b16 %v951_v32  ;;  %v993_v54 = vrot.slane %v1666_v41, %v1925_v33 }
  0x56   : > { %v661_v8 = vpack.c.b16 %v660_v7, %v660_v7  ;;  %v1012_v56 = vunpack.c.l.b16 %v965_v36  ;;  %v1018_v61 = vrot.slane %v1010_v34, 6  ;;  %v1007_v62 = vrot.slane %v1667_v53, %v1925_v33 }
  0x57   : > { %v2044_v24 = vld [vmem:[#allocation2] sm:$0xff]  ;;  %v1017_v57 = vsel %vm641_vm1, %v1016_v38, %v1008_v37  ;;  %v1013_v63 = vunpack.c.l.b16 %v979_v48  ;;  %v1020_v0 = vrot.slane %v1011_v49, 5  ;;  %v1014_v2 = vunpack.c.l.b16 %v993_v54 }
  0x58   : > { %1693 = vmatmul.mubr.msk.bf16.vlgmr.msra.gmra.mxu0 %vm471_vm0, %v661_v8  ;;  %v1019_v3 = vsel %vm644_vm2, %v1018_v61, %v1017_v57  ;;  %v1022_v4 = vrot.slane %v1012_v56, 4  ;;  %v1192_v5 = vrot.slane %v1008_v37, 1  ;;  %v1015_v6 = vunpack.c.l.b16 %v1007_v62 }
  0x59   : > { %1710 = vmatprep.mubr.msk.bf16.mxu0 %vm1816_vm4, %v1814_v25  ;;  %v1021_v7 = vsel %vm647_vm3, %v1020_v0, %v1019_v3  ;;  %v1024_v8 = vrot.slane %v1013_v63, 3  ;;  %v1194_v9 = vrot.slane %v1010_v34, 7  ;;  %v1200_v23 = vrot.slane %v1013_v63, 4 }
  0x5a   : > { %v1028_v17 = vrot.slane %v1015_v6, 1  ;;  %v1202_v26 = vrot.slane %v1014_v2, 3  ;;  %vm1034_vm12 = vcmask 1043456   ;;  %v1204_v31 = vrot.slane %v1015_v6, 2 }
  0x5b   : > { %v1083_v35 = vrot.slane %v1995_v42, 7  ;;  %v1085_v37 = vrot.slane %v1997_v43, 6  ;;  %v1087_v48 = vrot.slane %v1999_v44, 5  ;;  %v1089_v53 = vrot.slane %v2003_v50, 4 }
  0x5c   : > { %v1091_v42 = vrot.slane %v2010_v58, 3  ;;  %v1098_v58 = vrot.slane %v1946_v47, 7  ;;  %v1104_v6 = vrot.slane %v1955_v55, 4  ;;  %v1106_v47 = vrot.slane %v1959_v60, 3 }
  0x5d   : > { %vm1318_vm13 = vcmask 122880   ;;  %vm1319_vm14 = vsmask.f32 256 }
  0x5e   : > { %vm2132_vm15 = vmand %vm1318_vm13, %vm1319_vm14 }
 0x118   : > { %v846_v11 = vpop.f32.mrf.mxu0 }
 0x119   : > { %v2040_v12 = vsel %vm503_vm10, %v846_v11, -1e+30  ;;  %v1023_v11 = vsel %vm650_vm5, %v1022_v4, %v1021_v7 }
 0x11a   : > { %v1694_v13 = vpop.f32.mrf.mxu0  ;;  %v857_v14 = vsel %vm856_vm11, %v2040_v12, -inf }
 0x11b   : > { %858 = vmax.xlane.f32.xlu0 %v857_v14  ;;  %v1026_v13 = vrot.slane %v1014_v2, 2  ;;  %v1193_v14 = vsel %vm641_vm1, %v1009_v29, %v1192_v5  ;;  %v1081_v29 = vrot.slane %v1990_v39, 1  ;;  %v1102_v2 = vrot.slane %v1952_v52, 5 }
 0x11c   : > { %v849_v15 = vpop.f32.mrf.mxu0  ;;  %v1195_v18 = vsel %vm644_vm2, %v1194_v9, %v1193_v14 }
 0x11d   : > { %v1196_v15 = vrot.slane %v1011_v49, 6  ;;  %v1082_v39 = vsel %vm641_vm1, %v1992_v40, %v1081_v29  ;;  %v1096_v40 = vrot.slane %v1942_v45, 1 }
 0x11e   : > { %v1695_v16 = vpop.f32.mrf.mxu0  ;;  %v1084_v43 = vsel %vm644_vm2, %v1083_v35, %v1082_v39 }
 0x11f   : > { %v1025_v16 = vsel %vm653_vm6, %v1024_v8, %v1023_v11  ;;  %v1197_v21 = vsel %vm647_vm3, %v1196_v15, %v1195_v18  ;;  %v1086_v57 = vsel %vm647_vm3, %v1085_v37, %v1084_v43  ;;  %v1097_v63 = vsel %vm641_vm1, %v1944_v46, %v1096_v40 }
 0x120   : > { %v1027_v20 = vsel %vm656_vm7, %v1026_v13, %v1025_v16  ;;  %v1088_v44 = vsel %vm650_vm5, %v1087_v48, %v1086_v57  ;;  %v1099_v0 = vsel %vm644_vm2, %v1098_v58, %v1097_v63  ;;  %vm1404_vm1 = vsmask.f32 7938 }
 0x121   : > { %v1029_v27 = vsel %vm659_vm8, %v1028_v17, %v1027_v20  ;;  %v1090_v50 = vsel %vm653_vm6, %v1089_v53, %v1088_v44  ;;  %vm2176_vm2 = vmand %vm1318_vm13, %vm1404_vm1 }
 0x122   : > { %v1030_v32 = vpack.c.b16 %v1029_v27, %v1029_v27  ;;  %v1092_v61 = vsel %vm656_vm7, %v1091_v42, %v1090_v50 }
 0x124   : > { %v1036_v38 = vsel %vm1034_vm12, %v1030_v32, 0 }
 0x125   : > { %1697 = vmatpush3.bf16.msra.mxu1 %v1036_v38 }
 0x126   : > { %1702 = vmatprep.subr.bf16.mxu1 %v1814_v25 }
 0x1a4   : > { %v859_v19 = vpop.xlane.xlu0 %858 }
 0x1a5   : > { %v2049_v22 = vmax.f32 %v2044_v24, %v859_v19  ;;  %v1198_v19 = vrot.slane %v1012_v56, 5  ;;  %v1093_v56 = vrot.slane %v2012_v59, 2  ;;  %v1100_v59 = vrot.slane %v1950_v51, 6 }
 0x1a6   : > { %v1108_v51 = vrot.slane %v1963_v1, 2 }
 0x1a7   : > { %v861_v30 = vsub.f32 %v2044_v24, %v2049_v22  ;;  %1080 = vst.msk [vmem:[#allocation2] sm:$0xff] %vm466_vm9, %v2049_v22  ;;  %866 = vperm.xlu0 %1760, %v2049_v22   ;;  %v1199_v28 = vsel %vm650_vm5, %v1198_v19, %v1197_v21  ;;  %v1094_v62 = vsel %vm659_vm8, %v1093_v56, %v1092_v61  ;;  %v872_v22 = vld [vmem:[#allocation3] sm:$0xff]  ;;  %v1176_v56 = vld [vmem:[#allocation3 + $0x8] sm:$0xff] }
 0x1a8   : > { %v1201_v34 = vsel %vm653_vm6, %v1200_v23, %v1199_v28  ;;  %v1101_v4 = vsel %vm647_vm3, %v1100_v59, %v1099_v0  ;;  %v1095_v55 = vpack.c.b16 %v1094_v62, %v1094_v62  ;;  %v1159_v23 = vld [vmem:[#allocation2 + $0x8] sm:$0xff] }
 0x1a9   : > { %v1203_v36 = vsel %vm656_vm7, %v1202_v26, %v1201_v34  ;;  %v1103_v45 = vsel %vm650_vm5, %v1102_v2, %v1101_v4  ;;  %v862_v27 = vmul.f32 1.442695, %v861_v30 }
 0x1aa   : > { %v1205_v41 = vsel %vm659_vm8, %v1204_v31, %v1203_v36  ;;  %v1105_v46 = vsel %vm653_vm6, %v1104_v6, %v1103_v45  ;;  %v1321_v6 = vld [vmem:[%s2137_s30] sm:$0x1] }
 0x1ab   : > { %v1206_v49 = vpack.c.b16 %v1205_v41, %v1205_v41  ;;  %v1107_v8 = vsel %vm656_vm7, %v1106_v47, %v1105_v46 }
 0x1ac   : > { %v1109_v52 = vsel %vm659_vm8, %v1108_v51, %v1107_v8  ;;  %v1184_v51 = vld [vmem:[#allocation4 + $0x8] sm:$0xff] }
 0x1ad   : > { %v1211_v54 = vsel %vm1034_vm12, %v1206_v49, 0  ;;  %v1110_v9 = vpack.c.b16 %v1109_v52, %v1109_v52  ;;  %v880_v49 = vld [vmem:[#allocation4] sm:$0xff] }
 0x1ae   : > { %1709 = vmatpush3.bf16.msra.mxu0 %v1211_v54  ;;  %v1324_v8 = vld [vmem:[%s2137_s30 + $0x1] sm:$0x1]  ;;  %v1327_v52 = vld [vmem:[%s2137_s30 + $0x2] sm:$0x1] }
 0x222   : > { %v867_v3 = vpop.permute.xlu0 %866 }
 0x223   : > { %v869_v5 = vsub.f32 %v2040_v12, %v867_v3  ;;  %v1115_v12 = vsel %vm471_vm0, %v1110_v9, 0  ;;  %v1333_v9 = vld [vmem:[%s2137_s30 + $0x4] sm:$0x1] }
 0x225   : > { %v870_v7 = vmul.f32 1.442695, %v869_v5 }
 0x227   : > { %1762 = vpow2.f32 %v870_v7 }
 0x228   : > { %1764 = vpow2.f32 %v862_v27 }
 0x234   : > { %v1763_v11 = vpop.eup %1762 }
 0x235   : > { %v887_v13 = vpack.c.bf16 %v1763_v11, %v1763_v11  ;;  %v874_v10 = vsel %vm856_vm11, %v1763_v11, 0.0  ;;  %v1765_v29 = vpop.eup %1764 }
 0x236   : > { %v873_v30 = vmul.f32 %v1765_v29, %v872_v22 }
 0x237   : > { %1699 = vmatmul.mubr.msk.bf16.vlgmr.msra.gmra.mxu1 %vm856_vm11, %v887_v13 }
 0x238   : > { %1703 = vmatpush3.bf16.xpose.msra.mxu1 %v1115_v12  ;;  %1704 = vmatprep.mubr.msk.bf16.mxu1 %vm1816_vm4, %v1814_v25 }
 0x23f   : > { %1705 = vmatmul.mubr.msk.bf16.vlgmr.msra.gmra.mxu1 %vm471_vm0, %v1095_v55 }
 0x2f7   : > { %v1072_v60 = vpop.f32.mrf.mxu1 }
 0x2f9   : > { %v1700_v1 = vpop.f32.mrf.mxu1 }
 0x2fa   : > { %v1336_v1 = vld [vmem:[%s2137_s30 + $0x5] sm:$0x1] }
 0x2fb   : > { %v1075_v14 = vpop.f32.mrf.mxu1 }
 0x2fc   : > { %v1339_v14 = vld [vmem:[%s2137_s30 + $0x6] sm:$0x1] }
 0x2fd   : > { %v1701_v15 = vpop.f32.mrf.mxu1 }
 0x2ff   : > { %v1151_v16 = vpop.f32.mrf.mxu1 }
 0x300   : > { %v1157_v17 = vsel %vm503_vm10, %v1151_v16, -1e+30 }
 0x301   : > { %v1706_v18 = vpop.f32.mrf.mxu1  ;;  %v1160_v19 = vsel %vm856_vm11, %v1157_v17, -inf }
 0x302   : > { %1161 = vmax.xlane.f32.xlu1 %v1160_v19 }
 0x303   : > { %v1154_v20 = vpop.f32.mrf.mxu1 }
 0x305   : > { %v1707_v21 = vpop.f32.mrf.mxu1 }
 0x38b   : > { %v1162_v26 = vpop.xlane.xlu1 %1161 }
 0x38c   : > { %v1163_v25 = vmax.f32 %v1159_v23, %v1162_v26  ;;  %v1342_v26 = vld [vmem:[%s2137_s30 + $0x7] sm:$0x1] }
 0x38e   : > { %1255 = vst.msk [vmem:[#allocation2 + $0x8] sm:$0xff] %vm466_vm9, %v1163_v25  ;;  %1169 = vperm.xlu1 %1761, %v1163_v25   ;;  %v1164_v28 = vsub.f32 %v1159_v23, %v1163_v25 }
 0x390   : > { %v1165_v31 = vmul.f32 1.442695, %v1164_v28 }
 0x392   : > { %1766 = vpow2.f32 %v1165_v31 }
 0x39f   : > { %v1767_v32 = vpop.eup %1766 }
 0x3a0   : > { %v1177_v57 = vmul.f32 %v1767_v32, %v1176_v56 }
 0x3b2   : > { %875 = vadd.xlane.f32.xlu1 %v874_v10 }
 0x3c3   : > { %883 = vperm.xlu1 %1761, %v1765_v29  }
 0x3c7   : > { %1187 = vperm.xlu1 %1761, %v1767_v32  }
 0x409   : > { %v1170_v34 = vpop.permute.xlu1 %1169 }
 0x40a   : > { %v1172_v35 = vsub.f32 %v1157_v17, %v1170_v34 }
 0x40c   : > { %v1173_v36 = vmul.f32 1.442695, %v1172_v35 }
 0x40e   : > { %1768 = vpow2.f32 %v1173_v36 }
 0x41b   : > { %v1769_v37 = vpop.eup %1768 }
 0x41c   : > { %v1178_v38 = vsel %vm856_vm11, %v1769_v37, 0.0  ;;  %v1191_v24 = vpack.c.bf16 %v1769_v37, %v1769_v37 }
 0x41d   : > { %1179 = vadd.xlane.f32.xlu0 %v1178_v38 }
 0x41e   : > { %1711 = vmatmul.mubr.msk.bf16.vlgmr.msra.gmra.mxu0 %vm856_vm11, %v1191_v24 }
 0x43b   : > { %v876_v41 = vpop.xlane.xlu1 %875 }
 0x43c   : > { %v877_v48 = vadd.f32 %v876_v41, %v873_v30 }
 0x43e   : > { %879 = vst.msk [vmem:[#allocation3] sm:$0xff] %vm466_vm9, %v877_v48 }
 0x43f   : > { %v884_v53 = vpop.permute.xlu1 %883 }
 0x440   : > { %v886_v39 = vmul.f32 %v884_v53, %v880_v49 }
 0x442   : > { %v1078_v42 = vadd.f32 %v1072_v60, %v886_v39  ;;  %v1330_v60 = vld [vmem:[%s2137_s30 + $0x3] sm:$0x1] }
 0x443   : > { %v1188_v40 = vpop.permute.xlu1 %1187 }
 0x444   : > { %1079 = vst.msk [vmem:[#allocation4] sm:$0xff] %vm471_vm0, %v1078_v42  ;;  %v1190_v23 = vmul.f32 %v1188_v40, %v1184_v51 }
 0x445   : > { %v1259_v54 = vld [vmem:[#allocation3] sm:$0xff] }
 0x446   : > { %1770 = vrcp.f32 %v1259_v54 }
 0x44b   : > { %v1261_v58 = vld [vmem:[#allocation4] sm:$0xff] }
 0x453   : > { %v1771_v43 = vpop.eup %1770 }
 0x454   : > { %1264 = vperm.xlu1 %1761, %v1771_v43  }
 0x4a6   : > { %v1180_v44 = vpop.xlane.xlu0 %1179 }
 0x4a7   : > { %v1181_v50 = vadd.f32 %v1180_v44, %v1177_v57 }
 0x4a9   : > { %1182 = vst.msk [vmem:[#allocation3 + $0x8] sm:$0xff] %vm466_vm9, %v1181_v50 }
 0x4b0   : > { %v1345_v61 = vld [vmem:[#allocation3 + $0x8] sm:$0xff] }
 0x4b1   : > { %1772 = vrcp.f32 %v1345_v61 }
 0x4be   : > { %v1773_v62 = vpop.eup %1772 }
 0x4bf   : > { %1350 = vperm.xlu0 %1760, %v1773_v62  }
 0x4cf   : > { %v1265_v63 = vpop.permute.xlu1 %1264 }
 0x4d0   : > { %v1267_v59 = vmul.f32 %v1265_v63, %v1261_v58 }
 0x4d2   : > { %v1268_v0 = vpack.c.bf16 %v1267_v59, %v1267_v59 }
 0x4d4   : > { %v1276_v2 = vrot.slane %v1268_v0, %v1925_v33 }
 0x4d6   : > { %v1277_v3 = vcombine.high %v1276_v2, %v1276_v2  ;;  %v1284_v4 = vrot.slane %v1276_v2, %v1925_v33 }
 0x4d8   : > { %v1291_v7 = vrot.slane %v1277_v3, %v1925_v33  ;;  %v1292_v45 = vcombine.high %v1284_v4, %v1284_v4  ;;  %v1295_v47 = vunpack.i.h.s16 %v1284_v4  ;;  %v1671_v46 = vpack.i.b16 %v1284_v4, %v1284_v4 }
 0x4da   : > { %v1293_v11 = vcombine.high %v1291_v7, %v1291_v7  ;;  %v1297_v13 = vunpack.i.h.s16 %v1291_v7  ;;  %v1299_v12 = vunpack.i.h.s16 %v1292_v45  ;;  %v1303_v55 = vpack.i.b16 %v1295_v47, %v1295_v47 }
 0x4db   : > { %v1672_v15 = vpack.i.b16 %v1291_v7, %v1291_v7  ;;  %v1673_v16 = vpack.i.b16 %v1292_v45, %v1292_v45  ;;  %v1322_v17 = vsel %vm2132_vm15, %v1671_v46, %v1321_v6 }
 0x4dc   : > { %v1301_v18 = vunpack.i.h.s16 %v1293_v11  ;;  %v1305_v19 = vpack.i.b16 %v1297_v13, %v1297_v13  ;;  %v1307_v20 = vpack.i.b16 %v1299_v12, %v1299_v12  ;;  %v1674_v21 = vpack.i.b16 %v1293_v11, %v1293_v11  ;;  %1323 = vst [vmem:[%s2137_s30] sm:$0x1] %v1322_v17 }
 0x4dd   : > { %v1325_v25 = vsel %vm2132_vm15, %v1303_v55, %v1324_v8  ;;  %v1328_v27 = vsel %vm2132_vm15, %v1672_v15, %v1327_v52  ;;  %v1334_v28 = vsel %vm2132_vm15, %v1673_v16, %v1333_v9 }
 0x4de   : > { %v1309_v10 = vpack.i.b16 %v1301_v18, %v1301_v18  ;;  %1326 = vst [vmem:[%s2137_s30 + $0x1] sm:$0x1] %v1325_v25  ;;  %1329 = vst [vmem:[%s2137_s30 + $0x2] sm:$0x1] %v1328_v27  ;;  %v1331_v31 = vsel %vm2132_vm15, %v1305_v19, %v1330_v60  ;;  %v1337_v29 = vsel %vm2132_vm15, %v1307_v20, %v1336_v1  ;;  %v1247_v34 = vpop.f32.mrf.mxu0 }
 0x4df   : > { %1335 = vst [vmem:[%s2137_s30 + $0x4] sm:$0x1] %v1334_v28  ;;  %v1340_v32 = vsel %vm2132_vm15, %v1674_v21, %v1339_v14  ;;  %1332 = vst [vmem:[%s2137_s30 + $0x3] sm:$0x1] %v1331_v31  ;;  %v1253_v35 = vadd.f32 %v1247_v34, %v1190_v23 }
 0x4e0   : > { %1338 = vst [vmem:[%s2137_s30 + $0x5] sm:$0x1] %v1337_v29  ;;  %1341 = vst [vmem:[%s2137_s30 + $0x6] sm:$0x1] %v1340_v32  ;;  %v1343_v36 = vsel %vm2132_vm15, %v1309_v10, %v1342_v26  ;;  %v1712_v37 = vpop.f32.mrf.mxu0 }
 0x4e1   : > { %1344 = vst [vmem:[%s2137_s30 + $0x7] sm:$0x1] %v1343_v36  ;;  %1254 = vst.msk [vmem:[#allocation4 + $0x8] sm:$0xff] %vm471_vm0, %v1253_v35 }
 0x4e2   : > { %v1250_v38 = vpop.f32.mrf.mxu0 }
 0x4e3   : > { %v1406_v40 = vld [vmem:[%s2137_s30] sm:$0x1] }
 0x4e4   : > { %v1713_v24 = vpop.f32.mrf.mxu0 }
 0x4e5   : > { %v1409_v4 = vld [vmem:[%s2137_s30 + $0x1] sm:$0x1]  ;;  %v1412_v5 = vld [vmem:[%s2137_s30 + $0x2] sm:$0x1] }
 0x4e6   : > { %v1418_v6 = vld [vmem:[%s2137_s30 + $0x4] sm:$0x1]  ;;  %v1415_v47 = vld [vmem:[%s2137_s30 + $0x3] sm:$0x1] }
 0x4e7   : > { %v1421_v51 = vld [vmem:[%s2137_s30 + $0x5] sm:$0x1]  ;;  %v1424_v8 = vld [vmem:[%s2137_s30 + $0x6] sm:$0x1] }
 0x4e8   : > { %v1347_v30 = vld [vmem:[#allocation4 + $0x8] sm:$0xff] }
 0x4e9   : > { %v1427_v12 = vld [vmem:[%s2137_s30 + $0x7] sm:$0x1] }
 0x53a   : > { %v1351_v22 = vpop.permute.xlu0 %1350 }
 0x53b   : > { %v1353_v41 = vmul.f32 %v1351_v22, %v1347_v30 }
 0x53d   : > { %v1354_v48 = vpack.c.bf16 %v1353_v41, %v1353_v41 }
 0x53f   : > { %v1362_v49 = vrot.slane %v1354_v48, %v1925_v33 }
 0x541   : > { %v1363_v53 = vcombine.high %v1362_v49, %v1362_v49  ;;  %v1370_v39 = vrot.slane %v1362_v49, %v1925_v33 }
 0x543   : > { %v1377_v54 = vrot.slane %v1363_v53, %v1925_v33  ;;  %v1378_v43 = vcombine.high %v1370_v39, %v1370_v39  ;;  %v1381_v56 = vunpack.i.h.s16 %v1370_v39  ;;  %v1675_v57 = vpack.i.b16 %v1370_v39, %v1370_v39 }
 0x545   : > { %v1379_v44 = vcombine.high %v1377_v54, %v1377_v54  ;;  %v1383_v50 = vunpack.i.h.s16 %v1377_v54  ;;  %v1385_v61 = vunpack.i.h.s16 %v1378_v43  ;;  %v1389_v62 = vpack.i.b16 %v1381_v56, %v1381_v56 }
 0x546   : > { %v1676_v58 = vpack.i.b16 %v1377_v54, %v1377_v54  ;;  %v1677_v63 = vpack.i.b16 %v1378_v43, %v1378_v43  ;;  %v1407_v33 = vsel %vm2176_vm2, %v1675_v57, %v1406_v40 }
 0x547   : > { %v1387_v59 = vunpack.i.h.s16 %v1379_v44  ;;  %v1391_v0 = vpack.i.b16 %v1383_v50, %v1383_v50  ;;  %v1393_v2 = vpack.i.b16 %v1385_v61, %v1385_v61  ;;  %v1678_v3 = vpack.i.b16 %v1379_v44, %v1379_v44  ;;  %1408 = vst [vmem:[%s2137_s30] sm:$0x1] %v1407_v33 }
 0x548   : > { %v1410_v7 = vsel %vm2176_vm2, %v1389_v62, %v1409_v4  ;;  %v1413_v45 = vsel %vm2176_vm2, %v1676_v58, %v1412_v5  ;;  %v1419_v46 = vsel %vm2176_vm2, %v1677_v63, %v1418_v6  ;;  %1436 = sbr.rel (!%p1878_p6) target bundleno = 1366 (0x556), region = 167 }
 0x549   : > { %v1395_v52 = vpack.i.b16 %v1387_v59, %v1387_v59  ;;  %1411 = vst [vmem:[%s2137_s30 + $0x1] sm:$0x1] %v1410_v7  ;;  %1414 = vst [vmem:[%s2137_s30 + $0x2] sm:$0x1] %v1413_v45  ;;  %v1416_v9 = vsel %vm2176_vm2, %v1391_v0, %v1415_v47  ;;  %v1422_v11 = vsel %vm2176_vm2, %v1393_v2, %v1421_v51 }
 0x54a   : > { %1420 = vst [vmem:[%s2137_s30 + $0x4] sm:$0x1] %v1419_v46  ;;  %v1425_v13 = vsel %vm2176_vm2, %v1678_v3, %v1424_v8  ;;  %1417 = vst [vmem:[%s2137_s30 + $0x3] sm:$0x1] %v1416_v9 }
 0x54b   : > { %1423 = vst [vmem:[%s2137_s30 + $0x5] sm:$0x1] %v1422_v11  ;;  %1426 = vst [vmem:[%s2137_s30 + $0x6] sm:$0x1] %v1425_v13  ;;  %v1428_v55 = vsel %vm2176_vm2, %v1395_v52, %v1427_v12 }
 0x54c   : > { %1429 = vst [vmem:[%s2137_s30 + $0x7] sm:$0x1] %v1428_v55 }
 0x54e   : > { %v1457_v60 = vld [vmem:[%s2137_s30] sm:$0x1] }
 0x54f   : > { %1458 = vst [vmem:[%s1440_s6] sm:$0x1] %v1457_v60 }
 0x550   : > { %v1459_v1 = vld [vmem:[%s2137_s30 + $0x1] sm:$0x1]  ;;  %v1461_v14 = vld [vmem:[%s2137_s30 + $0x2] sm:$0x1] }
 0x551   : > { %1460 = vst [vmem:[%s1440_s6 + $0x2] sm:$0x1] %v1459_v1  ;;  %1462 = vst [vmem:[%s1440_s6 + $0x4] sm:$0x1] %v1461_v14  ;;  %v1463_v15 = vld [vmem:[%s2137_s30 + $0x3] sm:$0x1] }
 0x552   : > { %v1465_v16 = vld [vmem:[%s2137_s30 + $0x4] sm:$0x1]  ;;  %v1467_v17 = vld [vmem:[%s2137_s30 + $0x5] sm:$0x1]  ;;  %1464 = vst [vmem:[%s1440_s6 + $0x6] sm:$0x1] %v1463_v15 }
 0x553   : > { %1466 = vst [vmem:[%s1440_s6 + $0x8] sm:$0x1] %v1465_v16  ;;  %1468 = vst [vmem:[%s1440_s6 + $0xa] sm:$0x1] %v1467_v17  ;;  %v1469_v18 = vld [vmem:[%s2137_s30 + $0x6] sm:$0x1] }
 0x554   : > { %v1471_v19 = vld [vmem:[%s2137_s30 + $0x7] sm:$0x1]  ;;  %1470 = vst [vmem:[%s1440_s6 + $0xc] sm:$0x1] %v1469_v18 }
 0x555   : > { %1472 = vst [vmem:[%s1440_s6 + $0xe] sm:$0x1] %v1471_v19 }
 0x556 PF: > { %s13_s16 = sadd.s32 1, %s1812_s16   ;;  %s2252_s12 = smov %s1800_s13 }
 0x557   : > { %p10_p11 = scmp.ge.s32.totalorder %s13_s16, 4   ;;  %s2253_s13 = smov %s1883_s23 }
 0x558   : > { %s2254_s14 = smov %s1808_s15  ;;  %s2255_s15 = smov %s2257_s17 }
 0x559   :  { %12 = sbr.rel (!%p10_p11) target bundleno = 3 (0x3), region = 258 }

// kernel: transformer_model_forward.14
= control target key start
LH: loop header
LB: loop body
LE: loop exit
PB: predicated region body
PF: predicated region fallthrough
CT: control target
= control target key end

     0   :  { %v352_v0 = vmov 0.0   ;;  %vm353_vm0 = vmmov 0   ;;  %vm53_vm1 = vcmask 261120   ;;  %vm194_vm4 = vcmask 523264   ;;  %s455_s1 = inlined_call_operand.vmem [shape: bf16[32,64], index: 1, kind: input, shape index: {}]   ;;  %s456_s0 = inlined_call_operand.vmem [shape: f32[16,32], index: 0, kind: input, shape index: {}]   ;;  %s457_s3 = inlined_call_operand.vmem [shape: bf16[64,32], index: 3, kind: input, shape index: {}]   ;;  %s458_s2 = inlined_call_operand.vmem [shape: f32[1,64], index: 2, kind: input, shape index: {}]   ;;  %s459_s4 = inlined_call_operand.vmem [shape: f32[1,32], index: 4, kind: input, shape index: {}]   ;;  %s460_s5 = inlined_call_operand.vmem [shape: f32[1,32], index: 5, kind: input, shape index: {}]   ;;  %s461_s6 = inlined_call_operand.vmem [shape: f32[1,32], index: 6, kind: input, shape index: {}]   ;;  %s462_s7 = inlined_call_operand.vmem [shape: f32[16,32], index: 7, kind: output, shape index: {}]  }
   0x1   :  { %312 = vmatprep.subr.bf16.mxu0 %v352_v0  ;;  %v334_v1 = vld [vmem:[%s455_s1 + $0x8] sm:$0xff]   ;;  %316 = vmatprep.mubr.msk.bf16.mxu0 %vm353_vm0, %v352_v0  ;;  %v335_v2 = vld [vmem:[%s455_s1] sm:$0xff]   ;;  %v336_v6 = vld [vmem:[%s457_s3 + $0x18] sm:$0xff]  }
   0x2   :  { %320 = vmatprep.subr.bf16.mxu1 %v352_v0  ;;  %328 = vmatprep.mubr.msk.bf16.mxu1 %vm353_vm0, %v352_v0  ;;  %v403_v3 = vld [vmem:[%s456_s0] sm:$0xff]  ;;  %v408_v4 = vld [vmem:[%s456_s0 + $0x8] sm:$0xff]  ;;  %v337_v7 = vld [vmem:[%s457_s3 + $0x10] sm:$0xff]  }
   0x3   :  { %313 = vmatpush3.bf16.msra.mxu0 %v334_v1  ;;  %v29_v5 = vpack.c.bf16 %v408_v4, %v403_v3  ;;  %321 = vmatpush3.bf16.msra.mxu1 %v336_v6  ;;  %v338_v8 = vld [vmem:[%s457_s3 + $0x8] sm:$0xff]   ;;  %v339_v9 = vld [vmem:[%s457_s3] sm:$0xff]  }
   0x4   :  { %314 = vmatprep.subr.bf16.mxu0 %v352_v0  ;;  %322 = vmatprep.subr.bf16.mxu1 %v352_v0  ;;  %v292_v10 = vld [vmem:[%s458_s2] ss:$0 sm:$0xff] }
   0x7   :  { %315 = vmatpush3.bf16.msra.mxu0 %v335_v2  ;;  %323 = vmatpush3.bf16.msra.mxu1 %v337_v7 }
   0x8   :  { %324 = vmatprep.subr.bf16.mxu1 %v352_v0 }
   0xa   :  { %317 = vmatmul.mubr.msk.bf16.vlgmr.msra.gmra.mxu0 %vm53_vm1, %v29_v5 }
   0xb   :  { %325 = vmatpush3.bf16.msra.mxu1 %v338_v8  ;;  %v296_v8 = vld [vmem:[%s459_s4] ss:$0 sm:$0xff] }
   0xc   :  { %326 = vmatprep.subr.bf16.mxu1 %v352_v0 }
   0xf   :  { %327 = vmatpush3.bf16.msra.mxu1 %v339_v9 }
  0xca   :  { %v91_v11 = vpop.f32.mrf.mxu0 }
  0xcb   :  { %v92_v12 = vadd.f32 %v292_v10, %v91_v11 }
  0xcc   :  { %v318_v13 = vpop.f32.mrf.mxu0 }
  0xcd   :  { %v100_v14 = vmul.f32 0.70710677, %v92_v12  ;;  %v98_v0 = vmul.f32 0.5, %v92_v12 }
  0xce   :  { %v94_v15 = vpop.f32.mrf.mxu0 }
  0xcf   :  { %vm102_vm2 = vcmp.ge.f32.partialorder %v100_v14, 0.0  ;;  %v104_v16 = vsub.f32 0.0, %v100_v14  ;;  %v95_v17 = vadd.f32 %v292_v10, %v94_v15 }
  0xd0   :  { %v319_v18 = vpop.f32.mrf.mxu0 }
  0xd1   :  { %v106_v19 = vsel %vm102_vm2, %v100_v14, %v104_v16  ;;  %v101_v20 = vmul.f32 0.70710677, %v95_v17  ;;  %v99_v1 = vmul.f32 0.5, %v95_v17 }
  0xd2   :  { %v108_v21 = vmul.f32 0.3275911, %v106_v19  ;;  %v134_v27 = vsub.f32 0.0, %v106_v19 }
  0xd3   :  { %vm103_vm3 = vcmp.ge.f32.partialorder %v101_v20, 0.0  ;;  %v105_v22 = vsub.f32 0.0, %v101_v20 }
  0xd4   :  { %v110_v23 = vadd.f32 1.0, %v108_v21  ;;  %v136_v28 = vmul.f32 %v134_v27, %v106_v19 }
  0xd5   :  { %v107_v24 = vsel %vm103_vm3, %v101_v20, %v105_v22 }
  0xd6   :  { %340 = vrcp.f32 %v110_v23  ;;  %v109_v25 = vmul.f32 0.3275911, %v107_v24  ;;  %v135_v29 = vsub.f32 0.0, %v107_v24  ;;  %v138_v32 = vmul.f32 1.442695, %v136_v28 }
  0xd8   :  { %v111_v26 = vadd.f32 1.0, %v109_v25  ;;  %v137_v33 = vmul.f32 %v135_v29, %v107_v24 }
  0xda   :  { %342 = vrcp.f32 %v111_v26  ;;  %v140_v38 = vmul.f32 1.442695, %v137_v33 }
  0xdb   :  { %344 = vpow2.f32 %v138_v32 }
  0xdc   :  { %346 = vpow2.f32 %v140_v38 }
  0xe3   :  { %v341_v30 = vpop.eup %340 }
  0xe4   :  { %v116_v31 = vmul.f32 1.0614054, %v341_v30 }
  0xe6   :  { %v118_v34 = vadd.f32 -1.4531521, %v116_v31 }
  0xe7   :  { %v343_v35 = vpop.eup %342 }
  0xe8   :  { %v120_v36 = vmul.f32 %v341_v30, %v118_v34  ;;  %v117_v37 = vmul.f32 1.0614054, %v343_v35  ;;  %v345_v51 = vpop.eup %344  ;;  %v302_v34 = vld [vmem:[%s460_s5] ss:$0 sm:$0xff] }
  0xe9   :  { %v347_v56 = vpop.eup %346 }
  0xea   :  { %v122_v39 = vadd.f32 1.4214138, %v120_v36  ;;  %v119_v40 = vadd.f32 -1.4531521, %v117_v37  ;;  %v303_v36 = vld [vmem:[%s461_s6] ss:$0 sm:$0xff] }
  0xec   :  { %v124_v41 = vmul.f32 %v341_v30, %v122_v39  ;;  %v121_v42 = vmul.f32 %v343_v35, %v119_v40 }
  0xee   :  { %v126_v43 = vadd.f32 -0.28449672, %v124_v41  ;;  %v123_v44 = vadd.f32 1.4214138, %v121_v42 }
  0xf0   :  { %v128_v45 = vmul.f32 %v341_v30, %v126_v43  ;;  %v125_v46 = vmul.f32 %v343_v35, %v123_v44 }
  0xf2   :  { %v130_v47 = vadd.f32 0.2548296, %v128_v45  ;;  %v127_v48 = vadd.f32 -0.28449672, %v125_v46 }
  0xf4   :  { %v132_v49 = vmul.f32 %v341_v30, %v130_v47  ;;  %v129_v50 = vmul.f32 %v343_v35, %v127_v48 }
  0xf6   :  { %v142_v52 = vmul.f32 %v345_v51, %v132_v49  ;;  %v131_v53 = vadd.f32 0.2548296, %v129_v50 }
  0xf8   :  { %v144_v54 = vsub.f32 1.0, %v142_v52  ;;  %v133_v55 = vmul.f32 %v343_v35, %v131_v53 }
  0xfa   :  { %v146_v57 = vsub.f32 0.0, %v144_v54  ;;  %v143_v58 = vmul.f32 %v347_v56, %v133_v55 }
  0xfc   :  { %v148_v59 = vsel %vm102_vm2, %v144_v54, %v146_v57  ;;  %v145_v60 = vsub.f32 1.0, %v143_v58 }
  0xfd   :  { %v150_v62 = vadd.f32 1.0, %v148_v59 }
  0xfe   :  { %v147_v61 = vsub.f32 0.0, %v145_v60 }
  0xff   :  { %v152_v5 = vmul.f32 %v150_v62, %v98_v0 }
 0x100   :  { %v149_v63 = vsel %vm103_vm3, %v145_v60, %v147_v61 }
 0x101   :  { %v151_v2 = vadd.f32 1.0, %v149_v63 }
 0x103   :  { %v153_v6 = vmul.f32 %v151_v2, %v99_v1 }
 0x105   :  { %v154_v7 = vpack.c.bf16 %v153_v6, %v152_v5 }
 0x107   :  { %329 = vmatmul.mubr.msk.bf16.vlgmr.msra.gmra.mxu1 %vm194_vm4, %v154_v7 }
 0x1c7   :  { %v232_v9 = vpop.f32.mrf.mxu1 }
 0x1c8   :  { %v233_v10 = vadd.f32 %v296_v8, %v232_v9 }
 0x1c9   :  { %v330_v11 = vpop.f32.mrf.mxu1 }
 0x1ca   :  { %v239_v13 = vadd.f32 %v233_v10, %v403_v3 }
 0x1cb   :  { %v235_v14 = vpop.f32.mrf.mxu1 }
 0x1cc   :  { %v236_v15 = vadd.f32 %v296_v8, %v235_v14  ;;  %v241_v12 = vsel %vm53_vm1, %v239_v13, 0.0 }
 0x1cd   :  { %242 = vadd.xlane.f32.xlu0 %v241_v12  ;;  %v331_v16 = vpop.f32.mrf.mxu1 }
 0x1ce   :  { %v240_v17 = vadd.f32 %v236_v15, %v408_v4 }
 0x1d0   :  { %v244_v18 = vsel %vm53_vm1, %v240_v17, 0.0 }
 0x1d1   :  { %245 = vadd.xlane.f32.xlu0 %v244_v18 }
 0x256   :  { %v243_v19 = vpop.xlane.xlu0 %242 }
 0x257   :  { %v248_v20 = vmul.f32 0.03125, %v243_v19 }
 0x259   :  { %v250_v21 = vsub.f32 %v239_v13, %v248_v20 }
 0x25a   :  { %v246_v22 = vpop.xlane.xlu0 %245 }
 0x25b   :  { %v249_v23 = vmul.f32 0.03125, %v246_v22  ;;  %v252_v24 = vmul.f32 %v250_v21, %v250_v21 }
 0x25d   :  { %v251_v25 = vsub.f32 %v240_v17, %v249_v23  ;;  %v254_v3 = vsel %vm53_vm1, %v252_v24, 0.0 }
 0x25e   :  { %255 = vadd.xlane.f32.xlu1 %v254_v3 }
 0x25f   :  { %v253_v26 = vmul.f32 %v251_v25, %v251_v25 }
 0x261   :  { %v257_v27 = vsel %vm53_vm1, %v253_v26, 0.0 }
 0x262   :  { %258 = vadd.xlane.f32.xlu1 %v257_v27 }
 0x2e7   :  { %v256_v28 = vpop.xlane.xlu1 %255 }
 0x2e8   :  { %v260_v29 = vmul.f32 0.03125, %v256_v28 }
 0x2ea   :  { %v262_v4 = vadd.f32 1e-05, %v260_v29 }
 0x2eb   :  { %v259_v30 = vpop.xlane.xlu1 %258 }
 0x2ec   :  { %348 = vrsqrt.f32 %v262_v4  ;;  %v261_v31 = vmul.f32 0.03125, %v259_v30 }
 0x2ee   :  { %v263_v32 = vadd.f32 1e-05, %v261_v31 }
 0x2f0   :  { %350 = vrsqrt.f32 %v263_v32 }
 0x2f9   :  { %v349_v33 = vpop.eup %348 }
 0x2fa   :  { %v266_v35 = vmul.f32 %v349_v33, %v250_v21 }
 0x2fc   :  { %v275_v37 = vmul.f32 %v302_v34, %v266_v35 }
 0x2fd   :  { %v351_v38 = vpop.eup %350 }
 0x2fe   :  { %v284_v39 = vadd.f32 %v303_v36, %v275_v37  ;;  %v267_v40 = vmul.f32 %v351_v38, %v251_v25 }
 0x300   :  { %286 = vst.msk [vmem:[%s462_s7] sm:$0xff] %vm53_vm1, %v284_v39  ;;  %v276_v41 = vmul.f32 %v302_v34, %v267_v40 }
 0x302   :  { %v285_v42 = vadd.f32 %v303_v36, %v276_v41 }
 0x304   :  { %287 = vst.msk [vmem:[%s462_s7 + $0x8] sm:$0xff] %vm53_vm1, %v285_v42 }

// kernel: transformer_model_forward.19
= control target key start
LH: loop header
LB: loop body
LE: loop exit
PB: predicated region body
PF: predicated region fallthrough
CT: control target
= control target key end

     0   :  { %v257_v0 = vmov 0.0   ;;  %vm258_vm0 = vmmov 0   ;;  %vm46_vm1 = vcmask 261120   ;;  %vm158_vm3 = vcmask 523264   ;;  %s321_s1 = inlined_call_operand.vmem [shape: bf16[32,64], index: 1, kind: input, shape index: {}]   ;;  %s322_s0 = inlined_call_operand.vmem [shape: f32[8,32], index: 0, kind: input, shape index: {}]   ;;  %s323_s3 = inlined_call_operand.vmem [shape: bf16[64,128], index: 3, kind: input, shape index: {}]   ;;  %s324_s2 = inlined_call_operand.vmem [shape: f32[1,64], index: 2, kind: input, shape index: {}]   ;;  %s325_s4 = inlined_call_operand.vmem [shape: f32[1,128], index: 4, kind: input, shape index: {}]   ;;  %s326_s5 = inlined_call_operand.vmem [shape: f32[8,128], index: 5, kind: output, shape index: {}]  }
   0x1   :  { %225 = vmatprep.subr.bf16.mxu0 %v257_v0  ;;  %v247_v1 = vld [vmem:[%s321_s1 + $0x8] sm:$0xff]   ;;  %229 = vmatprep.mubr.msk.bf16.mxu0 %vm258_vm0, %v257_v0  ;;  %v248_v2 = vld [vmem:[%s321_s1] sm:$0xff]   ;;  %v249_v5 = vld [vmem:[%s323_s3 + $0x18] sm:$0xff]  }
   0x2   :  { %233 = vmatprep.subr.bf16.mxu1 %v257_v0  ;;  %241 = vmatprep.mubr.msk.bf16.mxu1 %vm258_vm0, %v257_v0  ;;  %v21_v3 = vld [vmem:[%s322_s0] sm:$0xff]  ;;  %v250_v6 = vld [vmem:[%s323_s3 + $0x10] sm:$0xff]   ;;  %v251_v7 = vld [vmem:[%s323_s3 + $0x8] sm:$0xff]  }
   0x3   :  { %226 = vmatpush3.bf16.msra.mxu0 %v247_v1  ;;  %v22_v4 = vpack.c.bf16 %v21_v3, %v21_v3  ;;  %234 = vmatpush3.bf16.msra.mxu1 %v249_v5  ;;  %v252_v8 = vld [vmem:[%s323_s3] sm:$0xff]  }
   0x4   :  { %227 = vmatprep.subr.bf16.mxu0 %v257_v0  ;;  %235 = vmatprep.subr.bf16.mxu1 %v257_v0  ;;  %v207_v9 = vld [vmem:[%s324_s2] ss:$0 sm:$0xff] }
   0x5   :  { %v211_v42 = vld [vmem:[%s325_s4] ss:$0 sm:$0xff] }
   0x7   :  { %228 = vmatpush3.bf16.msra.mxu0 %v248_v2  ;;  %236 = vmatpush3.bf16.msra.mxu1 %v250_v6 }
   0x8   :  { %237 = vmatprep.subr.bf16.mxu1 %v257_v0 }
   0xa   :  { %230 = vmatmul.mubr.msk.bf16.vlgmr.msra.gmra.mxu0 %vm46_vm1, %v22_v4 }
   0xb   :  { %238 = vmatpush3.bf16.msra.mxu1 %v251_v7 }
   0xc   :  { %239 = vmatprep.subr.bf16.mxu1 %v257_v0 }
   0xf   :  { %240 = vmatpush3.bf16.msra.mxu1 %v252_v8 }
  0xca   :  { %v84_v10 = vpop.f32.mrf.mxu0 }
  0xcb   :  { %v85_v11 = vadd.f32 %v207_v9, %v84_v10 }
  0xcc   :  { %v231_v12 = vpop.f32.mrf.mxu0 }
  0xcd   :  { %v91_v13 = vmul.f32 0.70710677, %v85_v11  ;;  %v90_v38 = vmul.f32 0.5, %v85_v11 }
  0xce   :  { %v87_v14 = vpop.f32.mrf.mxu0 }
  0xcf   :  { %vm92_vm2 = vcmp.ge.f32.partialorder %v91_v13, 0.0  ;;  %v93_v15 = vsub.f32 0.0, %v91_v13 }
  0xd0   :  { %v232_v16 = vpop.f32.mrf.mxu0 }
  0xd1   :  { %v94_v17 = vsel %vm92_vm2, %v91_v13, %v93_v15 }
  0xd2   :  { %v95_v18 = vmul.f32 0.3275911, %v94_v17  ;;  %v108_v20 = vsub.f32 0.0, %v94_v17 }
  0xd4   :  { %v96_v19 = vadd.f32 1.0, %v95_v18  ;;  %v109_v21 = vmul.f32 %v108_v20, %v94_v17 }
  0xd6   :  { %253 = vrcp.f32 %v96_v19  ;;  %v110_v24 = vmul.f32 1.442695, %v109_v21 }
  0xd8   :  { %255 = vpow2.f32 %v110_v24 }
  0xe3   :  { %v254_v22 = vpop.eup %253 }
  0xe4   :  { %v99_v23 = vmul.f32 1.0614054, %v254_v22 }
  0xe5   :  { %v256_v33 = vpop.eup %255 }
  0xe6   :  { %v100_v25 = vadd.f32 -1.4531521, %v99_v23 }
  0xe8   :  { %v101_v26 = vmul.f32 %v254_v22, %v100_v25 }
  0xea   :  { %v102_v27 = vadd.f32 1.4214138, %v101_v26 }
  0xec   :  { %v103_v28 = vmul.f32 %v254_v22, %v102_v27 }
  0xee   :  { %v104_v29 = vadd.f32 -0.28449672, %v103_v28 }
  0xf0   :  { %v105_v30 = vmul.f32 %v254_v22, %v104_v29 }
  0xf2   :  { %v106_v31 = vadd.f32 0.2548296, %v105_v30 }
  0xf4   :  { %v107_v32 = vmul.f32 %v254_v22, %v106_v31 }
  0xf6   :  { %v112_v34 = vmul.f32 %v256_v33, %v107_v32 }
  0xf8   :  { %v113_v35 = vsub.f32 1.0, %v112_v34 }
  0xfa   :  { %v114_v36 = vsub.f32 0.0, %v113_v35 }
  0xfc   :  { %v115_v37 = vsel %vm92_vm2, %v113_v35, %v114_v36 }
  0xfd   :  { %v116_v39 = vadd.f32 1.0, %v115_v37 }
  0xff   :  { %v117_v40 = vmul.f32 %v116_v39, %v90_v38 }
 0x101   :  { %v118_v41 = vpack.c.bf16 %v117_v40, %v117_v40 }
 0x103   :  { %242 = vmatmul.mubr.msk.bf16.vlgmr.msra.gmra.mxu1 %vm158_vm3, %v118_v41 }
 0x1c3   :  { %v196_v43 = vpop.f32.mrf.mxu1 }
 0x1c4   :  { %v197_v44 = vadd.f32 %v211_v42, %v196_v43 }
 0x1c5   :  { %v243_v45 = vpop.f32.mrf.mxu1 }
 0x1c6   :  { %202 = vst [vmem:[%s326_s5] sm:$0xff] %v197_v44 }
 0x1c7   :  { %v199_v46 = vpop.f32.mrf.mxu1 }
 0x1c9   :  { %v244_v47 = vpop.f32.mrf.mxu1 }

</bundles_post_ra>
